<compile_context>
chip_gen: v7x
topology: tpu7x:2x2x1
jax: 0.10.0
libtpu: 0.0.40
codegen_flags: <defaults>
</compile_context>

<pallas_src>
import functools

import jax
import jax.numpy as jnp
from jax.experimental import pallas as pl
from jax.experimental.pallas import tpu as pltpu

LANE = 128


def _round_up(x, m):
    return (x + m - 1) // m * m


def _cdiv(a, b):
    return (a + b - 1) // b


def actor_kernel(s_ref, w1_ref, b1_ref, w2_ref, b2_ref, w3_ref, b3_ref, out_ref):
    # layer 1: Linear(state_dim, 800) + ReLU  (bf16 x bf16 -> f32 MXU accumulate,
    # bf16 epilogue: cast once, bias add + ReLU in bf16, feeds next MXU pass).
    h1 = jnp.dot(s_ref[...], w1_ref[...], preferred_element_type=jnp.float32)
    h1 = jnp.maximum(h1.astype(jnp.bfloat16) + b1_ref[...], 0)
    # layer 2: Linear(800, 600) + ReLU
    h2 = jnp.dot(h1, w2_ref[...], preferred_element_type=jnp.float32)
    h2 = jnp.maximum(h2.astype(jnp.bfloat16) + b2_ref[...], 0)
    # layer 3: Linear(600, action_dim_padded) + tanh  (f32 bias add + tanh;
    # output lanes padded to a multiple of 128, sliced off in the wrapper).
    a = jnp.dot(h2, w3_ref[...], preferred_element_type=jnp.float32)
    out_ref[...] = jnp.tanh(a + b3_ref[...])


def init_actor_params(key, state_dim, action_dim):
    """Deterministic synthetic f32 parameters, torch-equivalent init/layout.

    Stored as (in, out) so each layer is y = x @ W + b (== torch x @ W_pt.T + b).
    """
    k1, k2, k3, k4, k5, k6 = jax.random.split(key, 6)

    def uniform(k, shape, fan_in):
        bound = 1.0 / jnp.sqrt(float(fan_in))
        return jax.random.uniform(k, shape, jnp.float32, -bound, bound)

    w1 = uniform(k1, (state_dim, 800), state_dim)
    b1 = uniform(k2, (1, 800), state_dim)
    w2 = uniform(k3, (800, 600), 800)
    b2 = uniform(k4, (1, 600), 800)
    w3 = uniform(k5, (600, action_dim), 600)
    b3 = uniform(k6, (1, action_dim), 600)
    return w1, b1, w2, b2, w3, b3


def prepare_actor_params(w1, b1, w2, b2, w3, b3, *, pad_hidden=False):
    """Kernel-ready params.

    * bf16 weights (half the dominant HBM bytes); bf16 biases for the bf16
      epilogue of layers 1/2; f32 bias for the final (tanh) layer.
    * Layer-3 output dim zero-padded to a multiple of 128 (lane-dense store).
    * pad_hidden=True additionally zero-pads the hidden dims 800->896 / 600->640
      (exact semantics: padded h1/h2 columns are relu(0+0)=0 and the padded
      w2/w3 rows are zero). Use for the large-B compute-bound regime.
    """
    action_dim = w3.shape[1]
    out_pad = _round_up(max(action_dim, LANE), LANE)
    if pad_hidden:
        h1p = _round_up(w1.shape[1], LANE)   # 800 -> 896
        h2p = _round_up(w2.shape[1], LANE)   # 600 -> 640
    else:
        h1p, h2p = w1.shape[1], w2.shape[1]

    def pad2(a, rows, cols):
        out = jnp.zeros((rows, cols), a.dtype)
        return out.at[: a.shape[0], : a.shape[1]].set(a)

    w1p = pad2(w1, w1.shape[0], h1p)
    b1p = pad2(b1, 1, h1p)
    w2p = pad2(w2, h1p, h2p)
    b2p = pad2(b2, 1, h2p)
    w3p = pad2(w3, h2p, out_pad)
    b3p = pad2(b3, 1, out_pad)
    return (
        w1p.astype(jnp.bfloat16), b1p.astype(jnp.bfloat16),
        w2p.astype(jnp.bfloat16), b2p.astype(jnp.bfloat16),
        w3p.astype(jnp.bfloat16), b3p.astype(jnp.float32),
    )


def _choose_batch_tiling(B, block_b):
    """Balanced batch tiles: each tile <= block_b, >=2 tiles once B >= 512 so
    both v7x TensorCores get a grid step, tile a multiple of 8 sublanes."""
    n_tiles = max(_cdiv(B, block_b), 2 if B >= 512 else 1)
    tb = _round_up(_cdiv(B, n_tiles), 8)
    bp = _round_up(B, tb)
    return tb, bp


@functools.partial(
    jax.jit, static_argnames=("action_dim", "block_b", "single_buffer_weights"))
def actor_forward(s, params, *, action_dim, block_b=1024,
                  single_buffer_weights=True):
    w1, b1, w2, b2, w3, b3 = params
    B, state_dim = s.shape
    h1 = w1.shape[1]
    h2 = w2.shape[1]
    out_pad = w3.shape[1]

    tb, bp = _choose_batch_tiling(B, block_b)

    # Pre-cast state to bf16 (halves state DMA) and pad batch rows to the tile.
    s = s.astype(jnp.bfloat16)
    if bp != B:
        s = jnp.pad(s, ((0, bp - B), (0, 0)))

    const = lambda i: (0, 0)

    def resident_spec(shape):
        # Weights/biases are revisited every grid step (constant index_map);
        # single-buffer them so they don't carry a redundant second VMEM buffer.
        if single_buffer_weights:
            return pl.BlockSpec(shape, const, pipeline_mode=pl.Buffered(1))
        return pl.BlockSpec(shape, const)

    out = pl.pallas_call(
        actor_kernel,
        out_shape=jax.ShapeDtypeStruct((bp, out_pad), jnp.float32),
        grid=(bp // tb,),
        in_specs=[
            pl.BlockSpec((tb, state_dim), lambda i: (i, 0)),   # state tile
            resident_spec((state_dim, h1)),                    # w1 (resident)
            resident_spec((1, h1)),                            # b1
            resident_spec((h1, h2)),                           # w2 (resident)
            resident_spec((1, h2)),                            # b2
            resident_spec((h2, out_pad)),                      # w3 (resident, padded N)
            resident_spec((1, out_pad)),                       # b3
        ],
        out_specs=pl.BlockSpec((tb, out_pad), lambda i: (i, 0)),
        compiler_params=pltpu.CompilerParams(
            dimension_semantics=("parallel",),                 # v7x: 2 TCs share batch
            vmem_limit_bytes=40 * 1024 * 1024),                # headroom for tb up to 1024
    )(s, w1, b1, w2, b2, w3, b3)
    return out[:B, :action_dim]


def actor_reference_bf16(s, params, action_dim):
    """Pure-JAX reference following the kernel's exact bf16 numerical path."""
    w1, b1, w2, b2, w3, b3 = params
    x = s.astype(jnp.bfloat16)
    h1 = jnp.dot(x, w1, preferred_element_type=jnp.float32)
    h1 = jnp.maximum(h1.astype(jnp.bfloat16) + b1, 0)
    h2 = jnp.dot(h1, w2, preferred_element_type=jnp.float32)
    h2 = jnp.maximum(h2.astype(jnp.bfloat16) + b2, 0)
    a = jnp.tanh(jnp.dot(h2, w3, preferred_element_type=jnp.float32) + b3)
    return a[:, :action_dim]


def actor_reference_f32(s, w1, b1, w2, b2, w3, b3):
    """Full-precision torch-equivalent forward."""
    h1 = jnp.maximum(s @ w1 + b1, 0.0)
    h2 = jnp.maximum(h1 @ w2 + b2, 0.0)
    return jnp.tanh(h2 @ w3 + b3)


def _run_and_check(s, raw_params, action_dim, *, pad_hidden, single_buffer):
    params = prepare_actor_params(*raw_params, pad_hidden=pad_hidden)
    out = jax.block_until_ready(
        actor_forward(s, params, action_dim=action_dim,
                      single_buffer_weights=single_buffer))
    assert out.shape == (s.shape[0], action_dim)
    # Tight check against a pure-JAX model of the same bf16 numerical path.
    ref_bf16 = actor_reference_bf16(s, params, action_dim)
    assert jnp.allclose(out, ref_bf16, atol=2e-3, rtol=2e-3)
    # Loose check against the full-f32 torch-equivalent forward (semantics).
    ref_f32 = actor_reference_f32(s, *raw_params)
    assert jnp.allclose(out, ref_f32, atol=5e-2, rtol=5e-2)
    return out


if __name__ == "__main__":
    state_dim = 16
    action_dim = 2

    key = jax.random.PRNGKey(0)
    k_in1, k_in2, k_params = jax.random.split(key, 3)
    raw_params = init_actor_params(k_params, state_dim, action_dim)

    # --- small batch (DMA/launch-bound regime), unpadded hidden dims ---------
    s_small = jax.random.normal(k_in1, (2, state_dim), jnp.float32)
    single_buffer = True
    try:
        _run_and_check(s_small, raw_params, action_dim,
                       pad_hidden=False, single_buffer=True)
    except jax.errors.JaxRuntimeError:
        # Conservative fallback: keep default double-buffering for the resident
        # weights if this jax/libtpu build rejects pl.Buffered(1) here.
        single_buffer = False
        _run_and_check(s_small, raw_params, action_dim,
                       pad_hidden=False, single_buffer=False)

    # --- larger batch (compute-bound regime): padded hidden dims, balanced ---
    # tiles (B=520 -> 2 tiles of 264 rows -> both v7x TensorCores get a step).
    s_big = jax.random.normal(k_in2, (520, state_dim), jnp.float32)
    _run_and_check(s_big, raw_params, action_dim,
                   pad_hidden=True, single_buffer=single_buffer)

    print("KERNEL_OK")
</pallas_src>

<mosaic_0001>
module attributes {stable_mosaic.version = 11 : i64} {
  func.func @actor_kernel(%arg0: i32, %arg1: memref<8x16xbf16, #tpu.memory_space<vmem>>, %arg2: memref<16x800xbf16, #tpu.memory_space<vmem>>, %arg3: memref<1x800xbf16, #tpu.memory_space<vmem>>, %arg4: memref<800x600xbf16, #tpu.memory_space<vmem>>, %arg5: memref<1x600xbf16, #tpu.memory_space<vmem>>, %arg6: memref<600x128xbf16, #tpu.memory_space<vmem>>, %arg7: memref<1x128xf32, #tpu.memory_space<vmem>>, %arg8: memref<8x128xf32, #tpu.memory_space<vmem>>) attributes {dimension_semantics = [#tpu.dimension_semantics<parallel>], iteration_bounds = array<i64: 1>, scalar_prefetch = 0 : i64, scratch_operands = 0 : i64, tpu.core_type = #tpu.core_type<tc>, window_params = [{transform_indices = @transform_0, window_bounds = array<i64: 8, 16>}, {pipeline_mode = #tpu.pipeline_mode<synchronous>, transform_indices = @transform_1, window_bounds = array<i64: 16, 800>}, {pipeline_mode = #tpu.pipeline_mode<synchronous>, transform_indices = @transform_2, window_bounds = array<i64: 1, 800>}, {pipeline_mode = #tpu.pipeline_mode<synchronous>, transform_indices = @transform_3, window_bounds = array<i64: 800, 600>}, {pipeline_mode = #tpu.pipeline_mode<synchronous>, transform_indices = @transform_4, window_bounds = array<i64: 1, 600>}, {pipeline_mode = #tpu.pipeline_mode<synchronous>, transform_indices = @transform_5, window_bounds = array<i64: 600, 128>}, {pipeline_mode = #tpu.pipeline_mode<synchronous>, transform_indices = @transform_6, window_bounds = array<i64: 1, 128>}, {transform_indices = @transform_7, window_bounds = array<i64: 8, 128>}]} {
    %c0 = arith.constant 0 : index
    %c0_0 = arith.constant 0 : index
    %0 = vector.load %arg1[%c0, %c0_0] : memref<8x16xbf16, #tpu.memory_space<vmem>>, vector<8x16xbf16>
    %c0_1 = arith.constant 0 : index
    %c0_2 = arith.constant 0 : index
    %1 = vector.load %arg2[%c0_1, %c0_2] : memref<16x800xbf16, #tpu.memory_space<vmem>>, vector<16x800xbf16>
    %cst = arith.constant dense<0.000000e+00> : vector<8x800xf32>
    %2 = tpu.matmul %0, %1, %cst {dimension_numbers = #tpu.dot_dimension_numbers<[1], [0], [0], [1], [0, 0, 1, 1], [], []>} : vector<8x16xbf16>, vector<16x800xbf16>, vector<8x800xf32> -> vector<8x800xf32>
    %3 = arith.truncf %2 : vector<8x800xf32> to vector<8x800xbf16>
    %c0_3 = arith.constant 0 : index
    %c0_4 = arith.constant 0 : index
    %4 = vector.load %arg3[%c0_3, %c0_4] : memref<1x800xbf16, #tpu.memory_space<vmem>>, vector<1x800xbf16>
    %5 = vector.broadcast %4 : vector<1x800xbf16> to vector<8x800xbf16>
    %6 = arith.addf %3, %5 : vector<8x800xbf16>
    %cst_5 = arith.constant 0.000000e+00 : bf16
    %7 = vector.broadcast %cst_5 : bf16 to vector<8x800xbf16>
    %8 = arith.maximumf %6, %7 : vector<8x800xbf16>
    %c0_6 = arith.constant 0 : index
    %c0_7 = arith.constant 0 : index
    %9 = vector.load %arg4[%c0_6, %c0_7] : memref<800x600xbf16, #tpu.memory_space<vmem>>, vector<800x600xbf16>
    %cst_8 = arith.constant dense<0.000000e+00> : vector<8x600xf32>
    %10 = tpu.matmul %8, %9, %cst_8 {dimension_numbers = #tpu.dot_dimension_numbers<[1], [0], [0], [1], [0, 0, 1, 1], [], []>} : vector<8x800xbf16>, vector<800x600xbf16>, vector<8x600xf32> -> vector<8x600xf32>
    %11 = arith.truncf %10 : vector<8x600xf32> to vector<8x600xbf16>
    %c0_9 = arith.constant 0 : index
    %c0_10 = arith.constant 0 : index
    %12 = vector.load %arg5[%c0_9, %c0_10] : memref<1x600xbf16, #tpu.memory_space<vmem>>, vector<1x600xbf16>
    %13 = vector.broadcast %12 : vector<1x600xbf16> to vector<8x600xbf16>
    %14 = arith.addf %11, %13 : vector<8x600xbf16>
    %cst_11 = arith.constant 0.000000e+00 : bf16
    %15 = vector.broadcast %cst_11 : bf16 to vector<8x600xbf16>
    %16 = arith.maximumf %14, %15 : vector<8x600xbf16>
    %c0_12 = arith.constant 0 : index
    %c0_13 = arith.constant 0 : index
    %17 = vector.load %arg6[%c0_12, %c0_13] : memref<600x128xbf16, #tpu.memory_space<vmem>>, vector<600x128xbf16>
    %cst_14 = arith.constant dense<0.000000e+00> : vector<8x128xf32>
    %18 = tpu.matmul %16, %17, %cst_14 {dimension_numbers = #tpu.dot_dimension_numbers<[1], [0], [0], [1], [0, 0, 1, 1], [], []>} : vector<8x600xbf16>, vector<600x128xbf16>, vector<8x128xf32> -> vector<8x128xf32>
    %c0_15 = arith.constant 0 : index
    %c0_16 = arith.constant 0 : index
    %19 = vector.load %arg7[%c0_15, %c0_16] : memref<1x128xf32, #tpu.memory_space<vmem>>, vector<1x128xf32>
    %20 = vector.broadcast %19 : vector<1x128xf32> to vector<8x128xf32>
    %21 = arith.addf %18, %20 : vector<8x128xf32>
    %22 = math.tanh %21 : vector<8x128xf32>
    %c0_17 = arith.constant 0 : index
    %c0_18 = arith.constant 0 : index
    %23 = vector.load %arg8[%c0_17, %c0_18] : memref<8x128xf32, #tpu.memory_space<vmem>>, vector<8x128xf32>
    tpu.vector_store %arg8[%c0_17, %c0_18], %22 {strides = array<i32>} : memref<8x128xf32, #tpu.memory_space<vmem>>, vector<8x128xf32>,
    return
  }
  func.func @transform_0(%arg0: i32) -> (i32, i32) {
    %c0_i32 = arith.constant 0 : i32
    %c0_i32_0 = arith.constant 0 : i32
    return %arg0, %c0_i32 : i32, i32
  }
  func.func @transform_1(%arg0: i32) -> (i32, i32) {
    %c0_i32 = arith.constant 0 : i32
    %c0_i32_0 = arith.constant 0 : i32
    %c0_i32_1 = arith.constant 0 : i32
    return %c0_i32, %c0_i32_0 : i32, i32
  }
  func.func @transform_2(%arg0: i32) -> (i32, i32) {
    %c0_i32 = arith.constant 0 : i32
    %c0_i32_0 = arith.constant 0 : i32
    %c0_i32_1 = arith.constant 0 : i32
    return %c0_i32, %c0_i32_0 : i32, i32
  }
  func.func @transform_3(%arg0: i32) -> (i32, i32) {
    %c0_i32 = arith.constant 0 : i32
    %c0_i32_0 = arith.constant 0 : i32
    %c0_i32_1 = arith.constant 0 : i32
    return %c0_i32, %c0_i32_0 : i32, i32
  }
  func.func @transform_4(%arg0: i32) -> (i32, i32) {
    %c0_i32 = arith.constant 0 : i32
    %c0_i32_0 = arith.constant 0 : i32
    %c0_i32_1 = arith.constant 0 : i32
    return %c0_i32, %c0_i32_0 : i32, i32
  }
  func.func @transform_5(%arg0: i32) -> (i32, i32) {
    %c0_i32 = arith.constant 0 : i32
    %c0_i32_0 = arith.constant 0 : i32
    %c0_i32_1 = arith.constant 0 : i32
    return %c0_i32, %c0_i32_0 : i32, i32
  }
  func.func @transform_6(%arg0: i32) -> (i32, i32) {
    %c0_i32 = arith.constant 0 : i32
    %c0_i32_0 = arith.constant 0 : i32
    %c0_i32_1 = arith.constant 0 : i32
    return %c0_i32, %c0_i32_0 : i32, i32
  }
  func.func @transform_7(%arg0: i32) -> (i32, i32) {
    %c0_i32 = arith.constant 0 : i32
    %c0_i32_0 = arith.constant 0 : i32
    return %arg0, %c0_i32 : i32, i32
  }
}

</mosaic_0001>

<bundles_post_ra>
// kernel: actor_forward.1
= control target key start
LH: loop header
LB: loop body
LE: loop exit
PB: predicated region body
PF: predicated region fallthrough
CT: control target
= control target key end

     0   :  { %12 = vsyncpa [#allocation3], 0  ;;  %s4226_s0 = inlined_call_operand.vmem [shape: bf16[8,16], index: 0, kind: input, shape index: {}]   ;;  %s4227_s1 = inlined_call_operand.hbm [shape: bf16[16,800], index: 1, kind: input, shape index: {}]   ;;  %s4228_s2 = inlined_call_operand.vmem [shape: bf16[1,800], index: 2, kind: input, shape index: {}]   ;;  %s4229_s3 = inlined_call_operand.hbm [shape: bf16[800,600], index: 3, kind: input, shape index: {}]   ;;  %s4230_s4 = inlined_call_operand.vmem [shape: bf16[1,600], index: 4, kind: input, shape index: {}]   ;;  %s4231_s5 = inlined_call_operand.hbm [shape: bf16[600,128], index: 5, kind: input, shape index: {}]   ;;  %s4232_s6 = inlined_call_operand.vmem [shape: f32[1,128], index: 6, kind: input, shape index: {}]   ;;  %s4233_s7 = inlined_call_operand.vmem [shape: f32[8,128], index: 7, kind: output, shape index: {}]  }
   0x1   :  { %13 = vsyncpa [#allocation5], 0  ;;  %s3991_s24 = smov [#allocation4]   ;;  %s3921_s28 = scalar_lea.hbm %s4229_s3, 32000 }
   0x2   :  { %s35_s25 = sshll.u32 %s3991_s24, 4  ;;  %p3922_p0 = scmp.ne.s32.totalorder %s4229_s3, %s3921_s28  ;;  %s36_s25 = int_to_ptr.vmem [resolvable:$true] %s35_s25 }
   0x3   :  { %p3925_p1 = scmp.lt.u32.totalorder %s3921_s28, %s4229_s3 }
   0x5   :  { %p3927_p2 = pnand %p3925_p1, %p3922_p0 }
   0x7   :  { %3930 = shalt.err (!%p3927_p2)
}
   0x8   :  { %s3931_s10 = scalar_lea.vmem %s36_s25, 32000  ;;  %p3936_p4 = scmp.lt.s32.totalorder %s36_s25, %s36_s25 }
   0x9   :  { %p3932_p3 = scmp.ne.s32.totalorder %s36_s25, %s3931_s10  ;;  %p3937_p5 = scmp.lt.s32.totalorder %s3931_s10, %s3931_s10 }
   0xb   :  { %p3938_p6 = por %p3937_p5, %p3936_p4 }
   0xd   :  { %p3939_p7 = pnand %p3938_p6, %p3932_p3 }
   0xf   :  { %3942 = shalt.err (!%p3939_p7)
}
  0x10   :  { %s3992_s11 = smov 320   ;;  %s3993_s12 = smov 20  }
  0x11   :  { %41 = dma.hbm_to_vmem [thread:$0]  %s4229_s3, 32000, %s36_s25, [#allocation5], %s3992_s11, %s3992_s11, %s3993_s12  }
  0x12   :  { %s3994_s15 = smov [#allocation2]   ;;  %s3943_s19 = scalar_lea.hbm %s4227_s1, 896 }
  0x13   :  { %s21_s16 = sshll.u32 %s3994_s15, 4  ;;  %p3944_p8 = scmp.ne.s32.totalorder %s4227_s1, %s3943_s19  ;;  %s22_s16 = int_to_ptr.vmem [resolvable:$true] %s21_s16 }
  0x14   :  { %p3947_p9 = scmp.lt.u32.totalorder %s3943_s19, %s4227_s1 }
  0x16   :  { %p3949_p10 = pnand %p3947_p9, %p3944_p8 }
  0x18   :  { %3952 = shalt.err (!%p3949_p10)
}
  0x19   :  { %s3953_s24 = scalar_lea.vmem %s22_s16, 896  ;;  %p3958_p12 = scmp.lt.s32.totalorder %s22_s16, %s22_s16 }
  0x1a   :  { %p3954_p11 = scmp.ne.s32.totalorder %s22_s16, %s3953_s24  ;;  %p3959_p13 = scmp.lt.s32.totalorder %s3953_s24, %s3953_s24 }
  0x1c   :  { %p3960_p0 = por %p3959_p13, %p3958_p12 }
  0x1e   :  { %p3961_p1 = pnand %p3960_p0, %p3954_p11 }
  0x20   :  { %3964 = shalt.err (!%p3961_p1)
}
  0x21   :  { %s3995_s3 = smov 448   ;;  %s3996_s25 = smov 28  }
  0x22   :  { %27 = dma.hbm_to_vmem [thread:$0]  %s4227_s1, 896, %s22_s16, [#allocation3], %s3995_s3, %s3995_s3, %s3996_s25  }
  0x23   :  { %s3997_s28 = smov [#allocation6]   ;;  %s3965_s9 = scalar_lea.hbm %s4231_s5, 4800 }
  0x24   :  { %s49_s29 = sshll.u32 %s3997_s28, 4  ;;  %p3966_p2 = scmp.ne.s32.totalorder %s4231_s5, %s3965_s9  ;;  %s50_s29 = int_to_ptr.vmem [resolvable:$true] %s49_s29 }
  0x25   :  { %p3969_p3 = scmp.lt.u32.totalorder %s3965_s9, %s4231_s5 }
  0x27   :  { %p3971_p4 = pnand %p3969_p3, %p3966_p2 }
  0x29   :  { %3974 = shalt.err (!%p3971_p4)
}
  0x2a   :  { %s3975_s14 = scalar_lea.vmem %s50_s29, 4800  ;;  %p3980_p6 = scmp.lt.s32.totalorder %s50_s29, %s50_s29 }
  0x2b   :  { %p3976_p5 = scmp.ne.s32.totalorder %s50_s29, %s3975_s14  ;;  %p3981_p7 = scmp.lt.s32.totalorder %s3975_s14, %s3975_s14 }
  0x2d   :  { %p3982_p8 = por %p3981_p7, %p3980_p6 }
  0x2f   :  { %p3983_p9 = pnand %p3982_p8, %p3976_p5 }
  0x31   :  { %3986 = shalt.err (!%p3983_p9)
}
  0x32   :  { %s3998_s1 = smov 64   ;;  %s3999_s15 = smov 4  }
  0x33   :  { %55 = dma.hbm_to_vmem [thread:$0]  %s4231_s5, 4800, %s50_s29, [#allocation5], %s3998_s1, %s3998_s1, %s3999_s15  }
  0x34   :  { %3987 = dma.done.wait [#allocation3], 896  }
  0x35   :  { %3988 = vsyncadd [#allocation3], 4294966400 }
  0x36   :  { %3989 = dma.done.wait [#allocation5], 36800  }
  0x37   :  { %3990 = vsyncadd [#allocation5], 4294930496  ;;  %v4000_v0 = vmov 0   ;;  %v3519_v1 = vld [vmem:[#allocation2 + $0x4] ss:$28 sps:$4 sm:$0xff]   ;;  %vm113_vm0 = vcmask 130048  }
  0x38   :  { %149 = vmatprep.mubr.bf16.mxu0 %v4000_v0  ;;  %190 = vmatprep.mubr.bf16.mxu1 %v4000_v0  ;;  %v3521_v2 = vld [vmem:[#allocation2] ss:$28 sps:$4 sm:$0xff]   ;;  %v68_v3 = vld [vmem:[%s4226_s0] sm:$0xf]  ;;  %v3522_v4 = vld [vmem:[#allocation2 + $0xc] ss:$28 sps:$4 sm:$0xff]  }
  0x39   :  { %117 = vmatprep.subr.bf16.mxu0 %v3519_v1  ;;  %v3524_v5 = vld [vmem:[#allocation2 + $0x8] ss:$28 sps:$4 sm:$0xff]   ;;  %v3525_v6 = vld [vmem:[#allocation2 + $0x10] ss:$28 sps:$4 sm:$0xff]   ;;  %158 = vmatprep.subr.bf16.mxu1 %v3522_v4  ;;  %v3528_v8 = vld [vmem:[#allocation2 + $0x18] ss:$28 sps:$4 sm:$0xff]  }
  0x3a   :  { %118 = vmatpush1.bf16.msra.mxu0 %v3521_v2  ;;  %v3527_v7 = vld [vmem:[#allocation2 + $0x14] ss:$28 sps:$4 sm:$0xff]   ;;  %159 = vmatpush1.bf16.msra.mxu1 %v3524_v5  ;;  %v3534_v10 = vld [vmem:[#allocation4 + $0xc] ss:$20 sps:$4 sm:$0xff]   ;;  %v4001_v11 = vmov 0.0   ;;  %vm4002_vm1 = vmmov 0  }
  0x3b   :  { %199 = vmatprep.subr.bf16.mxu0 %v3527_v7  ;;  %v3531_v9 = vld [vmem:[#allocation4 + $0x4] ss:$20 sps:$4 sm:$0xff]   ;;  %3452 = vmatprep.subr.bf16.mxu1 %v4001_v11  ;;  %v3529_v12 = vld [vmem:[#allocation4] ss:$20 sps:$4 sm:$0xff]   ;;  %v3532_v14 = vld [vmem:[#allocation4 + $0x8] ss:$20 sps:$4 sm:$0xff]  }
  0x3c   :  { %v3537_v13 = vld [vmem:[#allocation4 + $0x2c] ss:$20 sps:$4 sm:$0xff]   ;;  %v3540_v15 = vld [vmem:[#allocation4 + $0x34] ss:$20 sps:$4 sm:$0xff]   ;;  %v3538_v18 = vld [vmem:[#allocation4 + $0x30] ss:$20 sps:$4 sm:$0xff]  }
  0x3d   :  { %3033 = vmatmul.mubr.msk.bf16.vlgmr.msra.gmra.mrb[0].mxu0 %vm113_vm0, %v68_v3  ;;  %3034 = vmatmul.mubr.msk.bf16.vlgmr.msra.gmra.mrb[0].mxu1 %vm113_vm0, %v68_v3  ;;  %v3535_v16 = vld [vmem:[#allocation4 + $0x28] ss:$20 sps:$4 sm:$0xff]   ;;  %v3541_v20 = vld [vmem:[#allocation4 + $0x50] ss:$20 sps:$4 sm:$0xff]   ;;  %v3544_v22 = vld [vmem:[#allocation4 + $0x58] ss:$20 sps:$4 sm:$0xff]  }
  0x3e   :  { %200 = vmatpush1.bf16.msra.mxu0 %v3525_v6  ;;  %231 = vmatprep.mubr.bf16.mxu0 %v4000_v0  ;;  %v3543_v17 = vld [vmem:[#allocation4 + $0x54] ss:$20 sps:$4 sm:$0xff]   ;;  %v3546_v19 = vld [vmem:[#allocation4 + $0x5c] ss:$20 sps:$4 sm:$0xff]   ;;  %v3552_v23 = vld [vmem:[#allocation4 + $0x84] ss:$20 sps:$4 sm:$0xff]  }
  0x3f   :  { %3453 = vmatpush3.bf16.msra.mxu1 %v3528_v8  ;;  %3454 = vmatprep.mubr.msk.bf16.mxu1 %vm4002_vm1, %v4001_v11  ;;  %v3549_v21 = vld [vmem:[#allocation4 + $0x7c] ss:$20 sps:$4 sm:$0xff]   ;;  %v3547_v24 = vld [vmem:[#allocation4 + $0x78] ss:$20 sps:$4 sm:$0xff]   ;;  %v3550_v26 = vld [vmem:[#allocation4 + $0x80] ss:$20 sps:$4 sm:$0xff]  }
  0x40   :  { %2004 = vmatprep.subr.bf16.mxu0 %v3531_v9  ;;  %2168 = vmatprep.subr.bf16.mxu1 %v3534_v10  ;;  %v3555_v25 = vld [vmem:[#allocation4 + $0xa4] ss:$20 sps:$4 sm:$0xff]   ;;  %v3558_v27 = vld [vmem:[#allocation4 + $0xac] ss:$20 sps:$4 sm:$0xff]   ;;  %v3556_v30 = vld [vmem:[#allocation4 + $0xa8] ss:$20 sps:$4 sm:$0xff]  }
  0x41   :  { %v3553_v28 = vld [vmem:[#allocation4 + $0xa0] ss:$20 sps:$4 sm:$0xff]   ;;  %v3559_v32 = vld [vmem:[#allocation4 + $0xc8] ss:$20 sps:$4 sm:$0xff]   ;;  %v3562_v34 = vld [vmem:[#allocation4 + $0xd0] ss:$20 sps:$4 sm:$0xff]  }
  0x42   :  { %v3561_v29 = vld [vmem:[#allocation4 + $0xcc] ss:$20 sps:$4 sm:$0xff]   ;;  %v3564_v31 = vld [vmem:[#allocation4 + $0xd4] ss:$20 sps:$4 sm:$0xff]   ;;  %v3570_v35 = vld [vmem:[#allocation4 + $0xfc] ss:$20 sps:$4 sm:$0xff]  }
  0x43   :  { %v3567_v33 = vld [vmem:[#allocation4 + $0xf4] ss:$20 sps:$4 sm:$0xff]   ;;  %v3565_v36 = vld [vmem:[#allocation4 + $0xf0] ss:$20 sps:$4 sm:$0xff]   ;;  %v3568_v38 = vld [vmem:[#allocation4 + $0xf8] ss:$20 sps:$4 sm:$0xff]  }
  0x44   :  { %v3573_v37 = vld [vmem:[#allocation4 + $0x11c] ss:$20 sps:$4 sm:$0xff]   ;;  %v3576_v39 = vld [vmem:[#allocation4 + $0x124] ss:$20 sps:$4 sm:$0xff]   ;;  %v3574_v41 = vld [vmem:[#allocation4 + $0x120] ss:$20 sps:$4 sm:$0xff]  }
  0x45   :  { %3035 = vmatmul.mubr.msk.bf16.vlgmr.msra.gmra.mrb[4].mxu0 %vm113_vm0, %v68_v3  ;;  %3455 = vmatmul.mubr.msk.bf16.vlgmr.msra.gmra.mrb[4].mxu1 %vm113_vm0, %v68_v3  ;;  %v3571_v40 = vld [vmem:[#allocation4 + $0x118] ss:$20 sps:$4 sm:$0xff]   ;;  %v3577_v43 = vld [vmem:[#allocation4 + $0x140] ss:$20 sps:$4 sm:$0xff]   ;;  %v3580_v46 = vld [vmem:[#allocation4 + $0x148] ss:$20 sps:$4 sm:$0xff]  }
  0x46   :  { %2005 = vmatpush1.bf16.msra.mxu0 %v3529_v12  ;;  %2169 = vmatpush1.bf16.msra.mxu1 %v3532_v14  ;;  %v3579_v42 = vld [vmem:[#allocation4 + $0x144] ss:$20 sps:$4 sm:$0xff]   ;;  %v3582_v44 = vld [vmem:[#allocation4 + $0x14c] ss:$20 sps:$4 sm:$0xff]   ;;  %v3588_v47 = vld [vmem:[#allocation4 + $0x174] ss:$20 sps:$4 sm:$0xff]  }
  0x47   :  { %2006 = vmatprep.subr.bf16.mxu0 %v3537_v13  ;;  %2170 = vmatprep.subr.bf16.mxu1 %v3540_v15  ;;  %v3585_v45 = vld [vmem:[#allocation4 + $0x16c] ss:$20 sps:$4 sm:$0xff]   ;;  %v3583_v48 = vld [vmem:[#allocation4 + $0x168] ss:$20 sps:$4 sm:$0xff]   ;;  %v3586_v50 = vld [vmem:[#allocation4 + $0x170] ss:$20 sps:$4 sm:$0xff]  }
  0x48   :  { %v3591_v49 = vld [vmem:[#allocation4 + $0x194] ss:$20 sps:$4 sm:$0xff]   ;;  %v3594_v51 = vld [vmem:[#allocation4 + $0x19c] ss:$20 sps:$4 sm:$0xff]   ;;  %v3592_v54 = vld [vmem:[#allocation4 + $0x198] ss:$20 sps:$4 sm:$0xff]  }
  0x49   :  { %v3589_v52 = vld [vmem:[#allocation4 + $0x190] ss:$20 sps:$4 sm:$0xff]   ;;  %v3595_v56 = vld [vmem:[#allocation4 + $0x1b8] ss:$20 sps:$4 sm:$0xff]   ;;  %v3598_v58 = vld [vmem:[#allocation4 + $0x1c0] ss:$20 sps:$4 sm:$0xff]  }
  0x4a   :  { %2007 = vmatpush1.bf16.msra.mxu0 %v3535_v16  ;;  %2171 = vmatpush1.bf16.msra.mxu1 %v3538_v18  ;;  %v3597_v53 = vld [vmem:[#allocation4 + $0x1bc] ss:$20 sps:$4 sm:$0xff]   ;;  %v3600_v55 = vld [vmem:[#allocation4 + $0x1c4] ss:$20 sps:$4 sm:$0xff]   ;;  %v3606_v59 = vld [vmem:[#allocation4 + $0x1ec] ss:$20 sps:$4 sm:$0xff]   ;;  %v293_v16 = vlaneseq }
  0x4b   :  { %2008 = vmatprep.subr.bf16.mxu0 %v3543_v17  ;;  %2172 = vmatprep.subr.bf16.mxu1 %v3546_v19  ;;  %v3603_v57 = vld [vmem:[#allocation4 + $0x1e4] ss:$20 sps:$4 sm:$0xff]   ;;  %v3601_v60 = vld [vmem:[#allocation4 + $0x1e0] ss:$20 sps:$4 sm:$0xff]   ;;  %v3604_v62 = vld [vmem:[#allocation4 + $0x1e8] ss:$20 sps:$4 sm:$0xff]  }
  0x4c   :  { %v3609_v61 = vld [vmem:[#allocation4 + $0x20c] ss:$20 sps:$4 sm:$0xff]   ;;  %v3612_v63 = vld [vmem:[#allocation4 + $0x214] ss:$20 sps:$4 sm:$0xff]   ;;  %v3610_v2 = vld [vmem:[#allocation4 + $0x210] ss:$20 sps:$4 sm:$0xff]  }
  0x4d   :  { %v3607_v1 = vld [vmem:[#allocation4 + $0x208] ss:$20 sps:$4 sm:$0xff]   ;;  %v3613_v5 = vld [vmem:[#allocation4 + $0x230] ss:$20 sps:$4 sm:$0xff]   ;;  %v3616_v6 = vld [vmem:[#allocation4 + $0x238] ss:$20 sps:$4 sm:$0xff]  }
  0x4e   :  { %2009 = vmatpush1.bf16.msra.mxu0 %v3541_v20  ;;  %2173 = vmatpush1.bf16.msra.mxu1 %v3544_v22  ;;  %v3615_v3 = vld [vmem:[#allocation4 + $0x234] ss:$20 sps:$4 sm:$0xff]   ;;  %v3618_v4 = vld [vmem:[#allocation4 + $0x23c] ss:$20 sps:$4 sm:$0xff]   ;;  %v3624_v8 = vld [vmem:[#allocation4 + $0x264] ss:$20 sps:$4 sm:$0xff]  }
  0x4f   :  { %2010 = vmatprep.subr.bf16.mxu0 %v3549_v21  ;;  %2174 = vmatprep.subr.bf16.mxu1 %v3552_v23  ;;  %v3621_v7 = vld [vmem:[#allocation4 + $0x25c] ss:$20 sps:$4 sm:$0xff]   ;;  %v3619_v9 = vld [vmem:[#allocation4 + $0x258] ss:$20 sps:$4 sm:$0xff]   ;;  %v3622_v10 = vld [vmem:[#allocation4 + $0x260] ss:$20 sps:$4 sm:$0xff]  }
  0x50   :  { %v3627_v12 = vld [vmem:[#allocation4 + $0x284] ss:$20 sps:$4 sm:$0xff]   ;;  %v3630_v13 = vld [vmem:[#allocation4 + $0x28c] ss:$20 sps:$4 sm:$0xff]   ;;  %v4003_v14 = vmov 1966171168  }
  0x51   :  { %v291_v15 = vunpack.c.l.s4 %v4003_v14  ;;  %v294_v18 = vshrl.u32 %v293_v16, 7  ;;  %v287_v20 = vld [vmem:[%s4228_s2] sm:$0x7f]  ;;  %vm2000_vm2 = vcmask 261120   ;;  %vm2894_vm3 = vcmask 1043456  }
  0x52   :  { %2011 = vmatpush1.bf16.msra.mxu0 %v3547_v24  ;;  %2175 = vmatpush1.bf16.msra.mxu1 %v3550_v26  ;;  %v3637_v14 = vld [vmem:[#allocation4 + $0x2d0] ss:$20 sps:$4 sm:$0xff]   ;;  %vm2890_vm4 = vcmask 719872  }
  0x53   :  { %2012 = vmatprep.subr.bf16.mxu0 %v3555_v25  ;;  %2176 = vmatprep.subr.bf16.mxu1 %v3558_v27  ;;  %v292_v17 = vunpack.c.0.s8 %v291_v15  ;;  %v289_v25 = vcombine.high %v287_v20, %v287_v20  ;;  %v3640_v15 = vld [vmem:[#allocation4 + $0x2d8] ss:$20 sps:$4 sm:$0xff]  }
  0x55   :  { %v4093_v19 = vsub.s32 %v292_v17, %v294_v18  ;;  %v3645_v17 = vld [vmem:[#allocation4 + $0x2fc] ss:$20 sps:$4 sm:$0xff]  }
  0x56   :  { %2013 = vmatpush1.bf16.msra.mxu0 %v3553_v28  ;;  %2177 = vmatpush1.bf16.msra.mxu1 %v3556_v30  ;;  %v4105_v28 = vsub.s32 0, %v294_v18  ;;  %v3648_v18 = vld [vmem:[#allocation4 + $0x304] ss:$20 sps:$4 sm:$0xff]  }
  0x57   :  { %2014 = vmatprep.subr.bf16.mxu0 %v3561_v29  ;;  %2178 = vmatprep.subr.bf16.mxu1 %v3564_v31  ;;  %v296_v21 = vrot.slane %v287_v20, %v4093_v19  ;;  %v4108_v30 = vrot.slane %v289_v25, %v4093_v19  ;;  %v3654_v25 = vld [vmem:[#allocation4 + $0x32c] ss:$20 sps:$4 sm:$0xff]  }
  0x59   :  { %v304_v22 = vcombine.high %v296_v21, %v296_v21  ;;  %v4100_v23 = vrot.slane %v296_v21, %v4093_v19  ;;  %v3643_v21 = vld [vmem:[#allocation4 + $0x2f8] ss:$20 sps:$4 sm:$0xff]  }
  0x5a   :  { %2015 = vmatpush1.bf16.msra.mxu0 %v3559_v32  ;;  %2179 = vmatpush1.bf16.msra.mxu1 %v3562_v34 }
  0x5b   :  { %2016 = vmatprep.subr.bf16.mxu0 %v3567_v33  ;;  %2180 = vmatprep.subr.bf16.mxu1 %v3570_v35  ;;  %v326_v24 = vrot.slane %v304_v22, %v4093_v19  ;;  %v338_v27 = vpack.i.b16 %v4100_v23, %v4100_v23  ;;  %v319_v33 = vrot.slane %v4108_v30, %v4093_v19  ;;  %v3646_v22 = vld [vmem:[#allocation4 + $0x300] ss:$20 sps:$4 sm:$0xff]  }
  0x5d   :  { %v336_v26 = vcombine.high %v326_v24, %v326_v24  ;;  %v345_v29 = vpack.i.b16 %v326_v24, %v326_v24  ;;  %v343_v32 = vrot.slane %v338_v27, %v4105_v28  ;;  %v3651_v24 = vld [vmem:[#allocation4 + $0x324] ss:$20 sps:$4 sm:$0xff]   ;;  %v3652_v27 = vld [vmem:[#allocation4 + $0x328] ss:$20 sps:$4 sm:$0xff]  }
  0x5e   :  { %2017 = vmatpush1.bf16.msra.mxu0 %v3565_v36  ;;  %2181 = vmatpush1.bf16.msra.mxu1 %v3568_v38 }
  0x5f   :  { %2018 = vmatprep.subr.bf16.mxu0 %v3573_v37  ;;  %2182 = vmatprep.subr.bf16.mxu1 %v3576_v39  ;;  %v359_v31 = vpack.i.b16 %v336_v26, %v336_v26  ;;  %v350_v35 = vrot.slane %v345_v29, %v4105_v28  ;;  %v3649_v26 = vld [vmem:[#allocation4 + $0x320] ss:$20 sps:$4 sm:$0xff]  }
  0x60   :  { %v3657_v29 = vld [vmem:[#allocation4 + $0x34c] ss:$20 sps:$4 sm:$0xff]  }
  0x62   :  { %2019 = vmatpush1.bf16.msra.mxu0 %v3571_v40  ;;  %2183 = vmatpush1.bf16.msra.mxu1 %v3574_v41  ;;  %v364_v41 = vrot.slane %v359_v31, %v4105_v28  ;;  %v3660_v31 = vld [vmem:[#allocation4 + $0x354] ss:$20 sps:$4 sm:$0xff]  }
  0x63   :  { %2020 = vmatprep.subr.bf16.mxu0 %v3579_v42  ;;  %2184 = vmatprep.subr.bf16.mxu1 %v3582_v44 }
  0x66   :  { %2021 = vmatpush1.bf16.msra.mxu0 %v3577_v43  ;;  %2185 = vmatpush1.bf16.msra.mxu1 %v3580_v46 }
  0x67   :  { %2022 = vmatprep.subr.bf16.mxu0 %v3585_v45  ;;  %2186 = vmatprep.subr.bf16.mxu1 %v3588_v47  ;;  %v366_v45 = vpack.i.b16 %v319_v33, %v319_v33 }
  0x6a   :  { %2023 = vmatpush1.bf16.msra.mxu0 %v3583_v48  ;;  %2187 = vmatpush1.bf16.msra.mxu1 %v3586_v50 }
  0x6b   :  { %2024 = vmatprep.subr.bf16.mxu0 %v3591_v49  ;;  %2188 = vmatprep.subr.bf16.mxu1 %v3594_v51  ;;  %v3625_v51 = vld [vmem:[#allocation4 + $0x280] ss:$20 sps:$4 sm:$0xff]  }
  0x6e   :  { %2025 = vmatpush1.bf16.msra.mxu0 %v3589_v52  ;;  %2189 = vmatpush1.bf16.msra.mxu1 %v3592_v54  ;;  %v3628_v52 = vld [vmem:[#allocation4 + $0x288] ss:$20 sps:$4 sm:$0xff]  }
  0x6f   :  { %2026 = vmatprep.subr.bf16.mxu0 %v3597_v53  ;;  %2190 = vmatprep.subr.bf16.mxu1 %v3600_v55  ;;  %v3633_v55 = vld [vmem:[#allocation4 + $0x2ac] ss:$20 sps:$4 sm:$0xff]  }
  0x72   :  { %2027 = vmatpush1.bf16.msra.mxu0 %v3595_v56  ;;  %2191 = vmatpush1.bf16.msra.mxu1 %v3598_v58  ;;  %v3636_v56 = vld [vmem:[#allocation4 + $0x2b4] ss:$20 sps:$4 sm:$0xff]  }
  0x73   :  { %2028 = vmatprep.subr.bf16.mxu0 %v3603_v57  ;;  %2192 = vmatprep.subr.bf16.mxu1 %v3606_v59  ;;  %v371_v57 = vrot.slane %v366_v45, %v4105_v28  ;;  %v3673_v45 = vld [vmem:[#allocation4 + $0x3c0] ss:$20 sps:$4 sm:$0xff]  }
  0x76   :  { %2029 = vmatpush1.bf16.msra.mxu0 %v3601_v60  ;;  %2193 = vmatpush1.bf16.msra.mxu1 %v3604_v62  ;;  %v3631_v62 = vld [vmem:[#allocation4 + $0x2a8] ss:$20 sps:$4 sm:$0xff]  }
  0x77   :  { %2030 = vmatprep.subr.bf16.mxu0 %v3609_v61  ;;  %2194 = vmatprep.subr.bf16.mxu1 %v3612_v63  ;;  %v3634_v63 = vld [vmem:[#allocation4 + $0x2b0] ss:$20 sps:$4 sm:$0xff]  }
  0x7a   :  { %2031 = vmatpush1.bf16.msra.mxu0 %v3607_v1  ;;  %2195 = vmatpush1.bf16.msra.mxu1 %v3610_v2 }
  0x7b   :  { %2032 = vmatprep.subr.bf16.mxu0 %v3615_v3  ;;  %2196 = vmatprep.subr.bf16.mxu1 %v3618_v4  ;;  %v335_v3 = vcombine.high %v319_v33, %v319_v33  ;;  %v3639_v4 = vld [vmem:[#allocation4 + $0x2d4] ss:$20 sps:$4 sm:$0xff]   ;;  %v3658_v33 = vld [vmem:[#allocation4 + $0x350] ss:$20 sps:$4 sm:$0xff]  }
  0x7e   :  { %2033 = vmatpush1.bf16.msra.mxu0 %v3613_v5  ;;  %2197 = vmatpush1.bf16.msra.mxu1 %v3616_v6  ;;  %v3642_v5 = vld [vmem:[#allocation4 + $0x2dc] ss:$20 sps:$4 sm:$0xff]  }
  0x7f   :  { %2034 = vmatprep.subr.bf16.mxu0 %v3621_v7  ;;  %2198 = vmatprep.subr.bf16.mxu1 %v3624_v8 }
  0x82   :  { %2035 = vmatpush1.bf16.msra.mxu0 %v3619_v9  ;;  %2199 = vmatpush1.bf16.msra.mxu1 %v3622_v10  ;;  %v380_v10 = vpack.i.b16 %v335_v3, %v335_v3  ;;  %v334_v3 = vcombine.high %v4100_v23, %v4100_v23 }
  0x83   :  { %2045 = vmatprep.subr.bf16.mxu0 %v3627_v12  ;;  %2209 = vmatprep.subr.bf16.mxu1 %v3630_v13 }
  0x84   :  { %v385_v16 = vrot.slane %v380_v10, %v4105_v28  ;;  %v352_v10 = vpack.i.b16 %v334_v3, %v334_v3  ;;  %v3768_v3 = vld [vmem:[#allocation4 + $0x624] ss:$20 sps:$4 sm:$0xff]  }
 0x110   :  { %v151_v34 = vpop.f32.mrb[0].mxu0  ;;  %v4114_v40 = vpop.f32.mrb[0].mxu1 }
 0x111   :  { %v280_v36 = vpack.c.bf16 %v151_v34, %v151_v34  ;;  %v153_v37 = vpop.f32.mrb[1].mxu0  ;;  %v194_v44 = vpop.f32.mrb[1].mxu1  ;;  %v3663_v34 = vld [vmem:[#allocation4 + $0x374] ss:$20 sps:$4 sm:$0xff]  }
 0x112   :  { %v281_v38 = vpack.c.bf16 %v153_v37, %v153_v37  ;;  %v155_v39 = vpop.f32.mrb[2].mxu0  ;;  %v283_v47 = vpack.c.bf16 %v194_v44, %v194_v44  ;;  %v196_v48 = vpop.f32.mrb[2].mxu1  ;;  %v3664_v37 = vld [vmem:[#allocation4 + $0x378] ss:$20 sps:$4 sm:$0xff]  }
 0x113   :  { %v386_v42 = vadd.bf16 %v343_v32, %v280_v36  ;;  %v156_v43 = vpop.f32.mrb[3].mxu0  ;;  %v197_v49 = vpop.f32.mrb[3].mxu1  ;;  %v3655_v32 = vld [vmem:[#allocation4 + $0x348] ss:$20 sps:$4 sm:$0xff]   ;;  %v3661_v36 = vld [vmem:[#allocation4 + $0x370] ss:$20 sps:$4 sm:$0xff]  }
 0x114   :  { %v387_v46 = vadd.bf16 %v350_v35, %v281_v38  ;;  %v389_v53 = vadd.bf16 %v364_v41, %v283_v47  ;;  %v3666_v35 = vld [vmem:[#allocation4 + $0x37c] ss:$20 sps:$4 sm:$0xff]   ;;  %v3672_v39 = vld [vmem:[#allocation4 + $0x3a4] ss:$20 sps:$4 sm:$0xff]   ;;  %v3678_v44 = vld [vmem:[#allocation4 + $0x3cc] ss:$20 sps:$4 sm:$0xff]  }
 0x115   :  { %v4121_v54 = vmax.bf16 %v4000_v0, %v386_v42  ;;  %v3669_v38 = vld [vmem:[#allocation4 + $0x39c] ss:$20 sps:$4 sm:$0xff]   ;;  %v3667_v41 = vld [vmem:[#allocation4 + $0x398] ss:$20 sps:$4 sm:$0xff]   ;;  %v3670_v42 = vld [vmem:[#allocation4 + $0x3a0] ss:$20 sps:$4 sm:$0xff]  }
 0x116   :  { %v4118_v50 = vmax.bf16 %v4000_v0, %v387_v46  ;;  %v4127_v58 = vmax.bf16 %v4000_v0, %v389_v53  ;;  %v3675_v43 = vld [vmem:[#allocation4 + $0x3c4] ss:$20 sps:$4 sm:$0xff]   ;;  %v3676_v46 = vld [vmem:[#allocation4 + $0x3c8] ss:$20 sps:$4 sm:$0xff]   ;;  %v3681_v47 = vld [vmem:[#allocation4 + $0x3ec] ss:$20 sps:$4 sm:$0xff]  }
 0x117   :  { %v3684_v48 = vld [vmem:[#allocation4 + $0x3f4] ss:$20 sps:$4 sm:$0xff]   ;;  %v3690_v53 = vld [vmem:[#allocation4 + $0x41c] ss:$20 sps:$4 sm:$0xff]  }
 0x118   :  { %2036 = vmatprep.mubr.bf16.mxu0 %v4118_v50  ;;  %2200 = vmatprep.mubr.bf16.mxu1 %v4118_v50  ;;  %v233_v59 = vpop.f32.mrb[4].mxu0  ;;  %v274_v2 = vpop.f32.mrb[4].mxu1  ;;  %v3679_v49 = vld [vmem:[#allocation4 + $0x3e8] ss:$20 sps:$4 sm:$0xff]  }
 0x119   :  { %2037 = vmatmul.mubr.bf16.vlgmr.msra.gmra.mrb[8].mxu0 %v4121_v54  ;;  %2201 = vmatmul.mubr.bf16.vlgmr.msra.gmra.mrb[8].mxu1 %v4121_v54  ;;  %v284_v60 = vpack.c.bf16 %v233_v59, %v233_v59  ;;  %v4131_v61 = vpop.f32.mrb[5].mxu0  ;;  %v3456_v8 = vpop.f32.mrb[5].mxu1  ;;  %v286_v9 = vpack.c.bf16 %v274_v2, %v274_v2  ;;  %v3696_v59 = vld [vmem:[#allocation4 + $0x444] ss:$20 sps:$4 sm:$0xff]   ;;  %v305_v2 = vcombine.high %v4108_v30, %v4108_v30  ;;  %v3711_v30 = vld [vmem:[#allocation4 + $0x4b4] ss:$20 sps:$4 sm:$0xff]  }
 0x11a   :  { %2046 = vmatpush1.bf16.msra.mxu0 %v3625_v51  ;;  %2210 = vmatpush1.bf16.msra.mxu1 %v3628_v52  ;;  %v237_v1 = vpop.f32.mrb[6].mxu0  ;;  %v277_v12 = vpop.f32.mrb[6].mxu1  ;;  %v3682_v51 = vld [vmem:[#allocation4 + $0x3f0] ss:$20 sps:$4 sm:$0xff]   ;;  %v3687_v52 = vld [vmem:[#allocation4 + $0x414] ss:$20 sps:$4 sm:$0xff]  }
 0x11b   :  { %2047 = vmatprep.subr.bf16.mxu0 %v3633_v55  ;;  %2211 = vmatprep.subr.bf16.mxu1 %v3636_v56  ;;  %v4133_v6 = vadd.bf16 %v371_v57, %v284_v60  ;;  %v238_v7 = vpop.f32.mrb[7].mxu0  ;;  %v3457_v13 = vpop.f32.mrb[7].mxu1  ;;  %v4138_v20 = vadd.bf16 %v385_v16, %v286_v9  ;;  %v3685_v55 = vld [vmem:[#allocation4 + $0x410] ss:$20 sps:$4 sm:$0xff]   ;;  %v3688_v56 = vld [vmem:[#allocation4 + $0x418] ss:$20 sps:$4 sm:$0xff]   ;;  %v333_v9 = vrot.slane %v305_v2, %v4093_v19 }
 0x11c   :  { %2077 = vmatprep.mubr.bf16.mxu0 %v4127_v58  ;;  %2241 = vmatprep.mubr.bf16.mxu1 %v4127_v58  ;;  %v3693_v57 = vld [vmem:[#allocation4 + $0x43c] ss:$20 sps:$4 sm:$0xff]   ;;  %v3691_v60 = vld [vmem:[#allocation4 + $0x438] ss:$20 sps:$4 sm:$0xff]   ;;  %v3708_v8 = vld [vmem:[#allocation4 + $0x494] ss:$20 sps:$4 sm:$0xff]   ;;  %v357_v16 = vrot.slane %v352_v10, %v4105_v28 }
 0x11d   :  { %v3702_v1 = vld [vmem:[#allocation4 + $0x46c] ss:$20 sps:$4 sm:$0xff]   ;;  %v3703_v12 = vld [vmem:[#allocation4 + $0x488] ss:$20 sps:$4 sm:$0xff]   ;;  %v3706_v13 = vld [vmem:[#allocation4 + $0x490] ss:$20 sps:$4 sm:$0xff]   ;;  %v373_v23 = vpack.i.b16 %v333_v9, %v333_v9 }
 0x11e   :  { %2048 = vmatpush1.bf16.msra.mxu0 %v3631_v62  ;;  %2212 = vmatpush1.bf16.msra.mxu1 %v3634_v63  ;;  %v3694_v62 = vld [vmem:[#allocation4 + $0x440] ss:$20 sps:$4 sm:$0xff]   ;;  %v3699_v63 = vld [vmem:[#allocation4 + $0x464] ss:$20 sps:$4 sm:$0xff]   ;;  %v3765_v2 = vld [vmem:[#allocation4 + $0x61c] ss:$20 sps:$4 sm:$0xff]  }
 0x11f   :  { %2049 = vmatprep.subr.bf16.mxu0 %v3639_v4  ;;  %2213 = vmatprep.subr.bf16.mxu1 %v3642_v5  ;;  %v3697_v4 = vld [vmem:[#allocation4 + $0x460] ss:$20 sps:$4 sm:$0xff]   ;;  %v3700_v5 = vld [vmem:[#allocation4 + $0x468] ss:$20 sps:$4 sm:$0xff]  }
 0x120   :  { %v3705_v7 = vld [vmem:[#allocation4 + $0x48c] ss:$20 sps:$4 sm:$0xff]   ;;  %v3772_v10 = vld [vmem:[#allocation4 + $0x648] ss:$20 sps:$4 sm:$0xff]  }
 0x121   :  { %v3769_v9 = vld [vmem:[#allocation4 + $0x640] ss:$20 sps:$4 sm:$0xff]  }
 0x122   :  { %2050 = vmatpush1.bf16.msra.mxu0 %v3637_v14  ;;  %2214 = vmatpush1.bf16.msra.mxu1 %v3640_v15  ;;  %v3714_v14 = vld [vmem:[#allocation4 + $0x4bc] ss:$20 sps:$4 sm:$0xff]   ;;  %v282_v15 = vpack.c.bf16 %v4114_v40, %v4114_v40  ;;  %v3718_v40 = vld [vmem:[#allocation4 + $0x4e0] ss:$20 sps:$4 sm:$0xff]  }
 0x123   :  { %2051 = vmatprep.subr.bf16.mxu0 %v3645_v17  ;;  %2215 = vmatprep.subr.bf16.mxu1 %v3648_v18  ;;  %v3709_v17 = vld [vmem:[#allocation4 + $0x4b0] ss:$20 sps:$4 sm:$0xff]   ;;  %v3712_v18 = vld [vmem:[#allocation4 + $0x4b8] ss:$20 sps:$4 sm:$0xff]  }
 0x126   :  { %2052 = vmatpush1.bf16.msra.mxu0 %v3643_v21  ;;  %2216 = vmatpush1.bf16.msra.mxu1 %v3646_v22  ;;  %v3717_v21 = vld [vmem:[#allocation4 + $0x4dc] ss:$20 sps:$4 sm:$0xff]   ;;  %v3720_v22 = vld [vmem:[#allocation4 + $0x4e4] ss:$20 sps:$4 sm:$0xff]  }
 0x127   :  { %2053 = vmatprep.subr.bf16.mxu0 %v3651_v24  ;;  %2217 = vmatprep.subr.bf16.mxu1 %v3654_v25  ;;  %v285_v24 = vpack.c.bf16 %v4131_v61, %v4131_v61  ;;  %v378_v25 = vrot.slane %v373_v23, %v4105_v28  ;;  %v3729_v61 = vld [vmem:[#allocation4 + $0x52c] ss:$20 sps:$4 sm:$0xff]   ;;  %v3783_v23 = vld [vmem:[#allocation4 + $0x694] ss:$20 sps:$4 sm:$0xff]  }
 0x12a   :  { %2054 = vmatpush1.bf16.msra.mxu0 %v3649_v26  ;;  %2218 = vmatpush1.bf16.msra.mxu1 %v3652_v27  ;;  %v388_v26 = vadd.bf16 %v357_v16, %v282_v15  ;;  %v3715_v27 = vld [vmem:[#allocation4 + $0x4d8] ss:$20 sps:$4 sm:$0xff]   ;;  %v3786_v15 = vld [vmem:[#allocation4 + $0x69c] ss:$20 sps:$4 sm:$0xff]  }
 0x12b   :  { %2055 = vmatprep.subr.bf16.mxu0 %v3657_v29  ;;  %2219 = vmatprep.subr.bf16.mxu1 %v3660_v31  ;;  %v3723_v29 = vld [vmem:[#allocation4 + $0x504] ss:$20 sps:$4 sm:$0xff]   ;;  %v3726_v31 = vld [vmem:[#allocation4 + $0x50c] ss:$20 sps:$4 sm:$0xff]  }
 0x12c   :  { %v3781_v16 = vld [vmem:[#allocation4 + $0x690] ss:$20 sps:$4 sm:$0xff]  }
 0x12e   :  { %2056 = vmatpush1.bf16.msra.mxu0 %v3655_v32  ;;  %2220 = vmatpush1.bf16.msra.mxu1 %v3658_v33  ;;  %v391_v32 = vadd.bf16 %v378_v25, %v285_v24  ;;  %v4152_v33 = vmax.bf16 %v4000_v0, %v388_v26  ;;  %v3790_v24 = vld [vmem:[#allocation4 + $0x6c0] ss:$20 sps:$4 sm:$0xff]   ;;  %v3795_v25 = vld [vmem:[#allocation4 + $0x6e4] ss:$20 sps:$4 sm:$0xff]  }
 0x12f   :  { %2057 = vmatprep.subr.bf16.mxu0 %v3663_v34  ;;  %2221 = vmatprep.subr.bf16.mxu1 %v3666_v35  ;;  %v3721_v34 = vld [vmem:[#allocation4 + $0x500] ss:$20 sps:$4 sm:$0xff]   ;;  %v3724_v35 = vld [vmem:[#allocation4 + $0x508] ss:$20 sps:$4 sm:$0xff]  }
 0x130   :  { %v3798_v26 = vld [vmem:[#allocation4 + $0x6ec] ss:$20 sps:$4 sm:$0xff]  }
 0x132   :  { %2058 = vmatpush1.bf16.msra.mxu0 %v3661_v36  ;;  %2222 = vmatpush1.bf16.msra.mxu1 %v3664_v37  ;;  %v3732_v36 = vld [vmem:[#allocation4 + $0x534] ss:$20 sps:$4 sm:$0xff]   ;;  %v4155_v37 = vmax.bf16 %v4000_v0, %v391_v32 }
 0x133   :  { %2059 = vmatprep.subr.bf16.mxu0 %v3669_v38  ;;  %2223 = vmatprep.subr.bf16.mxu1 %v3672_v39  ;;  %v3727_v38 = vld [vmem:[#allocation4 + $0x528] ss:$20 sps:$4 sm:$0xff]   ;;  %v3730_v39 = vld [vmem:[#allocation4 + $0x530] ss:$20 sps:$4 sm:$0xff]  }
 0x134   :  { %v3799_v32 = vld [vmem:[#allocation4 + $0x708] ss:$20 sps:$4 sm:$0xff]  }
 0x136   :  { %2060 = vmatpush1.bf16.msra.mxu0 %v3667_v41  ;;  %2224 = vmatpush1.bf16.msra.mxu1 %v3670_v42  ;;  %v3735_v41 = vld [vmem:[#allocation4 + $0x554] ss:$20 sps:$4 sm:$0xff]   ;;  %v3738_v42 = vld [vmem:[#allocation4 + $0x55c] ss:$20 sps:$4 sm:$0xff]  }
 0x137   :  { %2061 = vmatprep.subr.bf16.mxu0 %v3675_v43  ;;  %2225 = vmatprep.subr.bf16.mxu1 %v3678_v44  ;;  %v3733_v43 = vld [vmem:[#allocation4 + $0x550] ss:$20 sps:$4 sm:$0xff]   ;;  %v3736_v44 = vld [vmem:[#allocation4 + $0x558] ss:$20 sps:$4 sm:$0xff]  }
 0x13a   :  { %2062 = vmatpush1.bf16.msra.mxu0 %v3673_v45  ;;  %2226 = vmatpush1.bf16.msra.mxu1 %v3676_v46  ;;  %v3741_v45 = vld [vmem:[#allocation4 + $0x57c] ss:$20 sps:$4 sm:$0xff]   ;;  %v3744_v46 = vld [vmem:[#allocation4 + $0x584] ss:$20 sps:$4 sm:$0xff]  }
 0x13b   :  { %2063 = vmatprep.subr.bf16.mxu0 %v3681_v47  ;;  %2227 = vmatprep.subr.bf16.mxu1 %v3684_v48  ;;  %v3739_v47 = vld [vmem:[#allocation4 + $0x578] ss:$20 sps:$4 sm:$0xff]   ;;  %v3742_v48 = vld [vmem:[#allocation4 + $0x580] ss:$20 sps:$4 sm:$0xff]  }
 0x13e   :  { %2064 = vmatpush1.bf16.msra.mxu0 %v3679_v49  ;;  %2228 = vmatpush1.bf16.msra.mxu1 %v3682_v51  ;;  %v3747_v49 = vld [vmem:[#allocation4 + $0x5a4] ss:$20 sps:$4 sm:$0xff]   ;;  %v3750_v51 = vld [vmem:[#allocation4 + $0x5ac] ss:$20 sps:$4 sm:$0xff]  }
 0x13f   :  { %2065 = vmatprep.subr.bf16.mxu0 %v3687_v52  ;;  %2229 = vmatprep.subr.bf16.mxu1 %v3690_v53  ;;  %v3745_v52 = vld [vmem:[#allocation4 + $0x5a0] ss:$20 sps:$4 sm:$0xff]   ;;  %v3748_v53 = vld [vmem:[#allocation4 + $0x5a8] ss:$20 sps:$4 sm:$0xff]  }
 0x142   :  { %2066 = vmatpush1.bf16.msra.mxu0 %v3685_v55  ;;  %2230 = vmatpush1.bf16.msra.mxu1 %v3688_v56  ;;  %v3753_v55 = vld [vmem:[#allocation4 + $0x5cc] ss:$20 sps:$4 sm:$0xff]   ;;  %v3756_v56 = vld [vmem:[#allocation4 + $0x5d4] ss:$20 sps:$4 sm:$0xff]  }
 0x143   :  { %2067 = vmatprep.subr.bf16.mxu0 %v3693_v57  ;;  %2231 = vmatprep.subr.bf16.mxu1 %v3696_v59  ;;  %v3751_v57 = vld [vmem:[#allocation4 + $0x5c8] ss:$20 sps:$4 sm:$0xff]   ;;  %v3754_v59 = vld [vmem:[#allocation4 + $0x5d0] ss:$20 sps:$4 sm:$0xff]  }
 0x146   :  { %2068 = vmatpush1.bf16.msra.mxu0 %v3691_v60  ;;  %2232 = vmatpush1.bf16.msra.mxu1 %v3694_v62  ;;  %v3759_v60 = vld [vmem:[#allocation4 + $0x5f4] ss:$20 sps:$4 sm:$0xff]   ;;  %v3762_v62 = vld [vmem:[#allocation4 + $0x5fc] ss:$20 sps:$4 sm:$0xff]  }
 0x147   :  { %2069 = vmatprep.subr.bf16.mxu0 %v3699_v63  ;;  %2233 = vmatprep.subr.bf16.mxu1 %v3702_v1  ;;  %v3757_v63 = vld [vmem:[#allocation4 + $0x5f0] ss:$20 sps:$4 sm:$0xff]   ;;  %v3760_v1 = vld [vmem:[#allocation4 + $0x5f8] ss:$20 sps:$4 sm:$0xff]  }
 0x14a   :  { %2070 = vmatpush1.bf16.msra.mxu0 %v3697_v4  ;;  %2234 = vmatpush1.bf16.msra.mxu1 %v3700_v5  ;;  %v3763_v4 = vld [vmem:[#allocation4 + $0x618] ss:$20 sps:$4 sm:$0xff]   ;;  %v3766_v5 = vld [vmem:[#allocation4 + $0x620] ss:$20 sps:$4 sm:$0xff]  }
 0x14b   :  { %2071 = vmatprep.subr.bf16.mxu0 %v3705_v7  ;;  %2235 = vmatprep.subr.bf16.mxu1 %v3708_v8  ;;  %v3771_v7 = vld [vmem:[#allocation4 + $0x644] ss:$20 sps:$4 sm:$0xff]   ;;  %v3774_v8 = vld [vmem:[#allocation4 + $0x64c] ss:$20 sps:$4 sm:$0xff]  }
 0x14e   :  { %2072 = vmatpush1.bf16.msra.mxu0 %v3703_v12  ;;  %2236 = vmatpush1.bf16.msra.mxu1 %v3706_v13  ;;  %v3777_v12 = vld [vmem:[#allocation4 + $0x66c] ss:$20 sps:$4 sm:$0xff]   ;;  %v3780_v13 = vld [vmem:[#allocation4 + $0x674] ss:$20 sps:$4 sm:$0xff]  }
 0x14f   :  { %2073 = vmatprep.subr.bf16.mxu0 %v3711_v30  ;;  %2237 = vmatprep.subr.bf16.mxu1 %v3714_v14  ;;  %v3775_v30 = vld [vmem:[#allocation4 + $0x668] ss:$20 sps:$4 sm:$0xff]   ;;  %v3778_v14 = vld [vmem:[#allocation4 + $0x670] ss:$20 sps:$4 sm:$0xff]  }
 0x152   :  { %2074 = vmatpush1.bf16.msra.mxu0 %v3709_v17  ;;  %2238 = vmatpush1.bf16.msra.mxu1 %v3712_v18  ;;  %v3784_v17 = vld [vmem:[#allocation4 + $0x698] ss:$20 sps:$4 sm:$0xff]   ;;  %v3789_v18 = vld [vmem:[#allocation4 + $0x6bc] ss:$20 sps:$4 sm:$0xff]  }
 0x153   :  { %2075 = vmatprep.subr.bf16.mxu0 %v3717_v21  ;;  %2239 = vmatprep.subr.bf16.mxu1 %v3720_v22  ;;  %v3792_v21 = vld [vmem:[#allocation4 + $0x6c4] ss:$20 sps:$4 sm:$0xff]  }
 0x154   :  { %v3787_v22 = vld [vmem:[#allocation4 + $0x6b8] ss:$20 sps:$4 sm:$0xff]  }
 0x156   :  { %2076 = vmatpush1.bf16.msra.mxu0 %v3715_v27  ;;  %2240 = vmatpush1.bf16.msra.mxu1 %v3718_v40  ;;  %v3793_v27 = vld [vmem:[#allocation4 + $0x6e0] ss:$20 sps:$4 sm:$0xff]   ;;  %v3796_v40 = vld [vmem:[#allocation4 + $0x6e8] ss:$20 sps:$4 sm:$0xff]  }
 0x157   :  { %2086 = vmatprep.subr.bf16.mxu0 %v3723_v29  ;;  %2250 = vmatprep.subr.bf16.mxu1 %v3726_v31  ;;  %v3801_v29 = vld [vmem:[#allocation4 + $0x70c] ss:$20 sps:$4 sm:$0xff]   ;;  %v3804_v31 = vld [vmem:[#allocation4 + $0x714] ss:$20 sps:$4 sm:$0xff]  }
 0x159   :  { %2078 = vmatmul.mubr.bf16.vlgmr.msra.gmra.mrb[8].mxu0 %v4152_v33  ;;  %2242 = vmatmul.mubr.bf16.vlgmr.msra.gmra.mrb[8].mxu1 %v4152_v33 }
 0x15a   :  { %2087 = vmatpush1.bf16.msra.mxu0 %v3721_v34  ;;  %2251 = vmatpush1.bf16.msra.mxu1 %v3724_v35  ;;  %v3802_v34 = vld [vmem:[#allocation4 + $0x710] ss:$20 sps:$4 sm:$0xff]   ;;  %v3808_v35 = vld [vmem:[#allocation4 + $0x734] ss:$20 sps:$4 sm:$0xff]  }
 0x15b   :  { %2088 = vmatprep.subr.bf16.mxu0 %v3729_v61  ;;  %2252 = vmatprep.subr.bf16.mxu1 %v3732_v36  ;;  %v3811_v61 = vld [vmem:[#allocation4 + $0x73c] ss:$20 sps:$4 sm:$0xff]  }
 0x15c   :  { %2118 = vmatprep.mubr.bf16.mxu0 %v4155_v37  ;;  %2282 = vmatprep.mubr.bf16.mxu1 %v4155_v37  ;;  %v3806_v36 = vld [vmem:[#allocation4 + $0x730] ss:$20 sps:$4 sm:$0xff]  }
 0x15e   :  { %2089 = vmatpush1.bf16.msra.mxu0 %v3727_v38  ;;  %2253 = vmatpush1.bf16.msra.mxu1 %v3730_v39  ;;  %v3809_v38 = vld [vmem:[#allocation4 + $0x738] ss:$20 sps:$4 sm:$0xff]   ;;  %v3814_v39 = vld [vmem:[#allocation4 + $0x75c] ss:$20 sps:$4 sm:$0xff]  }
 0x15f   :  { %2090 = vmatprep.subr.bf16.mxu0 %v3735_v41  ;;  %2254 = vmatprep.subr.bf16.mxu1 %v3738_v42  ;;  %v3817_v41 = vld [vmem:[#allocation4 + $0x764] ss:$20 sps:$4 sm:$0xff]  }
 0x160   :  { %v3812_v42 = vld [vmem:[#allocation4 + $0x758] ss:$20 sps:$4 sm:$0xff]  }
 0x162   :  { %2091 = vmatpush1.bf16.msra.mxu0 %v3733_v43  ;;  %2255 = vmatpush1.bf16.msra.mxu1 %v3736_v44  ;;  %v3815_v43 = vld [vmem:[#allocation4 + $0x760] ss:$20 sps:$4 sm:$0xff]   ;;  %v3820_v44 = vld [vmem:[#allocation4 + $0x784] ss:$20 sps:$4 sm:$0xff]  }
 0x163   :  { %2092 = vmatprep.subr.bf16.mxu0 %v3741_v45  ;;  %2256 = vmatprep.subr.bf16.mxu1 %v3744_v46  ;;  %v3823_v45 = vld [vmem:[#allocation4 + $0x78c] ss:$20 sps:$4 sm:$0xff]  }
 0x164   :  { %v3818_v46 = vld [vmem:[#allocation4 + $0x780] ss:$20 sps:$4 sm:$0xff]  }
 0x166   :  { %2093 = vmatpush1.bf16.msra.mxu0 %v3739_v47  ;;  %2257 = vmatpush1.bf16.msra.mxu1 %v3742_v48  ;;  %v3821_v47 = vld [vmem:[#allocation4 + $0x788] ss:$20 sps:$4 sm:$0xff]   ;;  %v4163_v48 = vmax.bf16 %v4000_v0, %v4133_v6  ;;  %v4171_v6 = vmax.bf16 %v4000_v0, %v4138_v20  ;;  %v3838_v20 = vld [vmem:[#allocation4 + $0x1a0] ss:$20 sps:$4 sm:$0xff]  }
 0x167   :  { %2094 = vmatprep.subr.bf16.mxu0 %v3747_v49  ;;  %2258 = vmatprep.subr.bf16.mxu1 %v3750_v51  ;;  %v3826_v49 = vld [vmem:[#allocation4 + $0x7ac] ss:$20 sps:$4 sm:$0xff]   ;;  %v3829_v51 = vld [vmem:[#allocation4 + $0x7b4] ss:$20 sps:$4 sm:$0xff]  }
 0x16a   :  { %2095 = vmatpush1.bf16.msra.mxu0 %v3745_v52  ;;  %2259 = vmatpush1.bf16.msra.mxu1 %v3748_v53  ;;  %v3824_v52 = vld [vmem:[#allocation4 + $0x7a8] ss:$20 sps:$4 sm:$0xff]   ;;  %v3827_v53 = vld [vmem:[#allocation4 + $0x7b0] ss:$20 sps:$4 sm:$0xff]  }
 0x16b   :  { %2096 = vmatprep.subr.bf16.mxu0 %v3753_v55  ;;  %2260 = vmatprep.subr.bf16.mxu1 %v3756_v56  ;;  %v3830_v55 = vld [vmem:[#allocation4 + $0x150] ss:$20 sps:$4 sm:$0xff]  }
 0x16c   :  { %v3831_v56 = vld [vmem:[#allocation4 + $0x3d0] ss:$20 sps:$4 sm:$0xff]  }
 0x16e   :  { %2097 = vmatpush1.bf16.msra.mxu0 %v3751_v57  ;;  %2261 = vmatpush1.bf16.msra.mxu1 %v3754_v59  ;;  %v3832_v57 = vld [vmem:[#allocation4 + $0x10] ss:$20 sps:$4 sm:$0xff]  }
 0x16f   :  { %2098 = vmatprep.subr.bf16.mxu0 %v3759_v60  ;;  %2262 = vmatprep.subr.bf16.mxu1 %v3762_v62  ;;  %v3833_v59 = vld [vmem:[#allocation4 + $0x290] ss:$20 sps:$4 sm:$0xff]   ;;  %v3834_v60 = vld [vmem:[#allocation4 + $0x178] ss:$20 sps:$4 sm:$0xff]  }
 0x170   :  { %v3835_v62 = vld [vmem:[#allocation4 + $0x3f8] ss:$20 sps:$4 sm:$0xff]  }
 0x172   :  { %2099 = vmatpush1.bf16.msra.mxu0 %v3757_v63  ;;  %2263 = vmatpush1.bf16.msra.mxu1 %v3760_v1  ;;  %v3836_v63 = vld [vmem:[#allocation4 + $0x38] ss:$20 sps:$4 sm:$0xff]  }
 0x173   :  { %2100 = vmatprep.subr.bf16.mxu0 %v3765_v2  ;;  %2264 = vmatprep.subr.bf16.mxu1 %v3768_v3  ;;  %v3837_v1 = vld [vmem:[#allocation4 + $0x2b8] ss:$20 sps:$4 sm:$0xff]   ;;  %v3839_v2 = vld [vmem:[#allocation4 + $0x420] ss:$20 sps:$4 sm:$0xff]  }
 0x174   :  { %v3840_v3 = vld [vmem:[#allocation4 + $0x60] ss:$20 sps:$4 sm:$0xff]  }
 0x176   :  { %2101 = vmatpush1.bf16.msra.mxu0 %v3763_v4  ;;  %2265 = vmatpush1.bf16.msra.mxu1 %v3766_v5  ;;  %v3841_v4 = vld [vmem:[#allocation4 + $0x2e0] ss:$20 sps:$4 sm:$0xff]   ;;  %v3842_v5 = vld [vmem:[#allocation4 + $0x1c8] ss:$20 sps:$4 sm:$0xff]  }
 0x177   :  { %2102 = vmatprep.subr.bf16.mxu0 %v3771_v7  ;;  %2266 = vmatprep.subr.bf16.mxu1 %v3774_v8  ;;  %v3843_v7 = vld [vmem:[#allocation4 + $0x448] ss:$20 sps:$4 sm:$0xff]  }
 0x178   :  { %v3844_v8 = vld [vmem:[#allocation4 + $0x88] ss:$20 sps:$4 sm:$0xff]  }
 0x17a   :  { %2103 = vmatpush1.bf16.msra.mxu0 %v3769_v9  ;;  %2267 = vmatpush1.bf16.msra.mxu1 %v3772_v10  ;;  %v3845_v9 = vld [vmem:[#allocation4 + $0x308] ss:$20 sps:$4 sm:$0xff]   ;;  %v3848_v10 = vld [vmem:[#allocation4 + $0xb0] ss:$20 sps:$4 sm:$0xff]  }
 0x17b   :  { %2104 = vmatprep.subr.bf16.mxu0 %v3777_v12  ;;  %2268 = vmatprep.subr.bf16.mxu1 %v3780_v13  ;;  %v3849_v12 = vld [vmem:[#allocation4 + $0x330] ss:$20 sps:$4 sm:$0xff]   ;;  %v3850_v13 = vld [vmem:[#allocation4 + $0x218] ss:$20 sps:$4 sm:$0xff]  }
 0x17e   :  { %2105 = vmatpush1.bf16.msra.mxu0 %v3775_v30  ;;  %2269 = vmatpush1.bf16.msra.mxu1 %v3778_v14  ;;  %v3851_v30 = vld [vmem:[#allocation4 + $0x498] ss:$20 sps:$4 sm:$0xff]  }
 0x17f   :  { %2106 = vmatprep.subr.bf16.mxu0 %v3783_v23  ;;  %2270 = vmatprep.subr.bf16.mxu1 %v3786_v15  ;;  %v3852_v14 = vld [vmem:[#allocation4 + $0xd8] ss:$20 sps:$4 sm:$0xff]   ;;  %v3854_v15 = vld [vmem:[#allocation4 + $0x240] ss:$20 sps:$4 sm:$0xff]  }
 0x180   :  { %v3853_v23 = vld [vmem:[#allocation4 + $0x358] ss:$20 sps:$4 sm:$0xff]  }
 0x182   :  { %2107 = vmatpush1.bf16.msra.mxu0 %v3781_v16  ;;  %2271 = vmatpush1.bf16.msra.mxu1 %v3784_v17  ;;  %v3855_v16 = vld [vmem:[#allocation4 + $0x4c0] ss:$20 sps:$4 sm:$0xff]  }
 0x183   :  { %2108 = vmatprep.subr.bf16.mxu0 %v3789_v18  ;;  %2272 = vmatprep.subr.bf16.mxu1 %v3792_v21  ;;  %v3856_v17 = vld [vmem:[#allocation4 + $0x100] ss:$20 sps:$4 sm:$0xff]   ;;  %v3858_v21 = vld [vmem:[#allocation4 + $0x268] ss:$20 sps:$4 sm:$0xff]  }
 0x184   :  { %v3857_v18 = vld [vmem:[#allocation4 + $0x380] ss:$20 sps:$4 sm:$0xff]  }
 0x186   :  { %2109 = vmatpush1.bf16.msra.mxu0 %v3787_v22  ;;  %2273 = vmatpush1.bf16.msra.mxu1 %v3790_v24  ;;  %v3859_v22 = vld [vmem:[#allocation4 + $0x4e8] ss:$20 sps:$4 sm:$0xff]  }
 0x187   :  { %2110 = vmatprep.subr.bf16.mxu0 %v3795_v25  ;;  %2274 = vmatprep.subr.bf16.mxu1 %v3798_v26  ;;  %v3860_v24 = vld [vmem:[#allocation4 + $0x128] ss:$20 sps:$4 sm:$0xff]   ;;  %v3862_v26 = vld [vmem:[#allocation4 + $0x650] ss:$20 sps:$4 sm:$0xff]  }
 0x188   :  { %v3861_v25 = vld [vmem:[#allocation4 + $0x3a8] ss:$20 sps:$4 sm:$0xff]  }
 0x18a   :  { %2111 = vmatpush1.bf16.msra.mxu0 %v3793_v27  ;;  %2275 = vmatpush1.bf16.msra.mxu1 %v3796_v40  ;;  %v3863_v27 = vld [vmem:[#allocation4 + $0x510] ss:$20 sps:$4 sm:$0xff]  }
 0x18b   :  { %2112 = vmatprep.subr.bf16.mxu0 %v3801_v29  ;;  %2276 = vmatprep.subr.bf16.mxu1 %v3804_v31  ;;  %v3864_v40 = vld [vmem:[#allocation4 + $0x790] ss:$20 sps:$4 sm:$0xff]   ;;  %v3865_v29 = vld [vmem:[#allocation4 + $0x678] ss:$20 sps:$4 sm:$0xff]  }
 0x18c   :  { %v3866_v31 = vld [vmem:[#allocation4 + $0x538] ss:$20 sps:$4 sm:$0xff]  }
 0x18e   :  { %2113 = vmatpush1.bf16.msra.mxu0 %v3799_v32  ;;  %2277 = vmatpush1.bf16.msra.mxu1 %v3802_v34  ;;  %v3867_v32 = vld [vmem:[#allocation4 + $0x7b8] ss:$20 sps:$4 sm:$0xff]   ;;  %v3868_v34 = vld [vmem:[#allocation4 + $0x6a0] ss:$20 sps:$4 sm:$0xff]  }
 0x18f   :  { %2114 = vmatprep.subr.bf16.mxu0 %v3808_v35  ;;  %2278 = vmatprep.subr.bf16.mxu1 %v3811_v61  ;;  %v3880_v35 = vld [vmem:[#allocation6 + $0x40] sm:$0xff]  }
 0x190   :  { %v3869_v61 = vld [vmem:[#allocation4 + $0x560] ss:$20 sps:$4 sm:$0xff]  }
 0x192   :  { %2115 = vmatpush1.bf16.msra.mxu0 %v3806_v36  ;;  %2279 = vmatpush1.bf16.msra.mxu1 %v3809_v38  ;;  %v3884_v36 = vld [vmem:[#allocation6 + $0x48] sm:$0xff]   ;;  %v3872_v38 = vld [vmem:[#allocation4 + $0x6f0] ss:$20 sps:$4 sm:$0xff]  }
 0x193   :  { %2116 = vmatprep.subr.bf16.mxu0 %v3814_v39  ;;  %2280 = vmatprep.subr.bf16.mxu1 %v3817_v41  ;;  %v3886_v39 = vld [vmem:[#allocation6 + $0x8] sm:$0xff]   ;;  %v3888_v41 = vld [vmem:[#allocation6 + $0x50] sm:$0xff]  }
 0x196   :  { %2117 = vmatpush1.bf16.msra.mxu0 %v3812_v42  ;;  %2281 = vmatpush1.bf16.msra.mxu1 %v3815_v43  ;;  %v3873_v42 = vld [vmem:[#allocation4 + $0x5b0] ss:$20 sps:$4 sm:$0xff]   ;;  %v3874_v43 = vld [vmem:[#allocation4 + $0x718] ss:$20 sps:$4 sm:$0xff]  }
 0x197   :  { %2127 = vmatprep.subr.bf16.mxu0 %v3820_v44  ;;  %2291 = vmatprep.subr.bf16.mxu1 %v3823_v45  ;;  %v3890_v44 = vld [vmem:[#allocation6 + $0x10] sm:$0xff]   ;;  %v3892_v45 = vld [vmem:[#allocation6 + $0x58] sm:$0xff]  }
 0x199   :  { %2119 = vmatmul.mubr.bf16.vlgmr.msra.gmra.mrb[8].mxu0 %v4163_v48  ;;  %2283 = vmatmul.mubr.bf16.vlgmr.msra.gmra.mrb[8].mxu1 %v4163_v48 }
 0x19a   :  { %2128 = vmatpush1.bf16.msra.mxu0 %v3818_v46  ;;  %2292 = vmatpush1.bf16.msra.mxu1 %v3821_v47  ;;  %v3875_v46 = vld [vmem:[#allocation4 + $0x5d8] ss:$20 sps:$4 sm:$0xff]   ;;  %v3876_v47 = vld [vmem:[#allocation4 + $0x740] ss:$20 sps:$4 sm:$0xff]  }
 0x19b   :  { %2129 = vmatprep.subr.bf16.mxu0 %v3826_v49  ;;  %2293 = vmatprep.subr.bf16.mxu1 %v3829_v51  ;;  %v3894_v49 = vld [vmem:[#allocation6 + $0x18] sm:$0xff]   ;;  %v3896_v51 = vld [vmem:[#allocation6 + $0x60] sm:$0xff]  }
 0x19c   :  { %2159 = vmatprep.mubr.bf16.mxu0 %v4000_v0  ;;  %2323 = vmatprep.mubr.bf16.mxu1 %v4000_v0 }
 0x19e   :  { %2130 = vmatpush1.bf16.msra.mxu0 %v3824_v52  ;;  %2294 = vmatpush1.bf16.msra.mxu1 %v3827_v53  ;;  %v3877_v52 = vld [vmem:[#allocation4 + $0x600] ss:$20 sps:$4 sm:$0xff]   ;;  %v3878_v53 = vld [vmem:[#allocation4 + $0x768] ss:$20 sps:$4 sm:$0xff]  }
 0x19f   :  { %3332 = vmatprep.subr.bf16.mxu0 %v3830_v55  ;;  %3354 = vmatprep.subr.bf16.mxu1 %v3831_v56  ;;  %v3898_v55 = vld [vmem:[#allocation6 + $0x20] sm:$0xff]   ;;  %v3900_v56 = vld [vmem:[#allocation6 + $0x68] sm:$0xff]  }
 0x1a5   :  { %3287 = vmatmul.mubr.msk.bf16.vlgmr.msra.gmra.mrb[8].mxu0 %vm2000_vm2, %v4171_v6  ;;  %3288 = vmatmul.mubr.msk.bf16.vlgmr.msra.gmra.mrb[8].mxu1 %vm2000_vm2, %v4171_v6 }
 0x1a6   :  { %3333 = vmatpush3.bf16.msra.mxu0 %v3832_v57  ;;  %3355 = vmatpush3.bf16.msra.mxu1 %v3833_v59  ;;  %v3881_v57 = vld [vmem:[#allocation6 + $0xc0] sm:$0xff]   ;;  %v3902_v59 = vld [vmem:[#allocation6 + $0x28] sm:$0xff]  }
 0x1a7   :  { %2364 = vmatprep.mubr.bf16.mxu0 %v4118_v50  ;;  %2404 = vmatprep.mubr.bf16.mxu1 %v4127_v58  ;;  %v3846_v50 = vld [vmem:[#allocation4 + $0x1f0] ss:$20 sps:$4 sm:$0xff]  }
 0x1a8   :  { %3334 = vmatprep.subr.bf16.mxu0 %v3834_v60  ;;  %3356 = vmatprep.subr.bf16.mxu1 %v3835_v62  ;;  %v3847_v58 = vld [vmem:[#allocation4 + $0x470] ss:$20 sps:$4 sm:$0xff]   ;;  %v3885_v62 = vld [vmem:[#allocation6 + $0xc8] sm:$0xff]  }
 0x1a9   :  { %v3883_v60 = vld [vmem:[#allocation6 + $0x80] sm:$0xff]  }
 0x1aa   :  { %3335 = vmatpush3.bf16.msra.mxu0 %v3836_v63  ;;  %3357 = vmatpush3.bf16.msra.mxu1 %v3837_v1  ;;  %v3887_v63 = vld [vmem:[#allocation6 + $0x88] sm:$0xff]   ;;  %v3889_v1 = vld [vmem:[#allocation6 + $0xd0] sm:$0xff]  }
 0x1ab   :  { %3336 = vmatprep.subr.bf16.mxu0 %v3838_v20  ;;  %3358 = vmatprep.subr.bf16.mxu1 %v3839_v2  ;;  %v3891_v20 = vld [vmem:[#allocation6 + $0x90] sm:$0xff]   ;;  %v3893_v2 = vld [vmem:[#allocation6 + $0xd8] sm:$0xff]  }
 0x1ae   :  { %3337 = vmatpush3.bf16.msra.mxu0 %v3840_v3  ;;  %3359 = vmatpush3.bf16.msra.mxu1 %v3841_v4  ;;  %v3895_v3 = vld [vmem:[#allocation6 + $0x98] sm:$0xff]   ;;  %v3897_v4 = vld [vmem:[#allocation6 + $0xe0] sm:$0xff]  }
 0x1af   :  { %3338 = vmatprep.subr.bf16.mxu0 %v3842_v5  ;;  %3360 = vmatprep.subr.bf16.mxu1 %v3843_v7  ;;  %v3899_v5 = vld [vmem:[#allocation6 + $0xa0] sm:$0xff]   ;;  %v3901_v7 = vld [vmem:[#allocation6 + $0xe8] sm:$0xff]  }
 0x1b2   :  { %3339 = vmatpush3.bf16.msra.mxu0 %v3844_v8  ;;  %3361 = vmatpush3.bf16.msra.mxu1 %v3845_v9  ;;  %v3903_v8 = vld [vmem:[#allocation6 + $0xa8] sm:$0xff]   ;;  %v3906_v9 = vld [vmem:[#allocation6 + $0xf0] sm:$0xff]  }
 0x1b3   :  { %3340 = vmatprep.subr.bf16.mxu0 %v3846_v50  ;;  %3362 = vmatprep.subr.bf16.mxu1 %v3847_v58  ;;  %v3907_v50 = vld [vmem:[#allocation6 + $0x30] sm:$0xff]  }
 0x1b4   :  { %v3908_v58 = vld [vmem:[#allocation6 + $0xb0] sm:$0xff]  }
 0x1b6   :  { %3341 = vmatpush3.bf16.msra.mxu0 %v3848_v10  ;;  %3363 = vmatpush3.bf16.msra.mxu1 %v3849_v12  ;;  %v3909_v10 = vld [vmem:[#allocation6 + $0x78] sm:$0xff]  }
 0x1b7   :  { %3342 = vmatprep.subr.bf16.mxu0 %v3850_v13  ;;  %3364 = vmatprep.subr.bf16.mxu1 %v3851_v30  ;;  %v3910_v12 = vld [vmem:[#allocation6 + $0xf8] sm:$0xff]  }
 0x1b8   :  { %v3911_v13 = vld [vmem:[#allocation6 + $0x38] sm:$0xff]  }
 0x1b9   :  { %v3912_v30 = vld [vmem:[#allocation6 + $0xb8] sm:$0xff]  }
 0x1ba   :  { %3343 = vmatpush3.bf16.msra.mxu0 %v3852_v14  ;;  %3365 = vmatpush3.bf16.msra.mxu1 %v3853_v23  ;;  %v4193_v14 = vld [vmem:[%s4230_s4] sm:$0x1f] }
 0x1bb   :  { %3344 = vmatprep.subr.bf16.mxu0 %v3854_v15  ;;  %3366 = vmatprep.subr.bf16.mxu1 %v3855_v16  ;;  %v2506_v23 = vrot.slane %v4193_v14, %v4093_v19 }
 0x1bd   :  { %v2514_v15 = vcombine.high %v2506_v23, %v2506_v23  ;;  %v2521_v16 = vrot.slane %v2506_v23, %v4093_v19 }
 0x1be   :  { %3345 = vmatpush3.bf16.msra.mxu0 %v3856_v17  ;;  %3367 = vmatpush3.bf16.msra.mxu1 %v3857_v18 }
 0x1bf   :  { %3346 = vmatprep.subr.bf16.mxu0 %v3858_v21  ;;  %3368 = vmatprep.subr.bf16.mxu1 %v3859_v22  ;;  %v2535_v17 = vrot.slane %v2514_v15, %v4093_v19  ;;  %v2536_v18 = vcombine.high %v2521_v16, %v2521_v16  ;;  %v2539_v22 = vpack.i.b16 %v2521_v16, %v2521_v16 }
 0x1c1   :  { %v2537_v21 = vcombine.high %v2535_v17, %v2535_v17 }
 0x1c2   :  { %3347 = vmatpush3.bf16.msra.mxu0 %v3860_v24  ;;  %3369 = vmatpush3.bf16.msra.mxu1 %v3861_v25  ;;  %v2553_v24 = vpack.i.b16 %v2536_v18, %v2536_v18  ;;  %v2546_v25 = vpack.i.b16 %v2535_v17, %v2535_v17 }
 0x1c3   :  { %3376 = vmatprep.subr.bf16.mxu0 %v3862_v26  ;;  %3458 = vmatprep.subr.bf16.mxu1 %v4001_v11  ;;  %v2560_v26 = vpack.i.b16 %v2537_v21, %v2537_v21 }
 0x1c5   :  { %2365 = vmatmul.mubr.bf16.vlgmr.msra.gmra.mrb[12].mxu0 %v4121_v54  ;;  %2405 = vmatmul.mubr.bf16.vlgmr.msra.gmra.mrb[12].mxu1 %v4152_v33  ;;  %v3870_v54 = vld [vmem:[#allocation4 + $0x6c8] ss:$20 sps:$4 sm:$0xff]   ;;  %v3882_v33 = vld [vmem:[#allocation6] sm:$0xff]  }
 0x1c6   :  { %3377 = vmatpush3.bf16.msra.mxu0 %v3863_v27  ;;  %2444 = vmatprep.mubr.bf16.mxu0 %v4155_v37  ;;  %v3871_v37 = vld [vmem:[#allocation4 + $0x588] ss:$20 sps:$4 sm:$0xff]   ;;  %v2544_v27 = vrot.slane %v2539_v22, %v4105_v28 }
 0x1c7   :  { %3459 = vmatpush3.bf16.msra.mxu1 %v3864_v40  ;;  %3378 = vmatprep.subr.bf16.mxu0 %v3865_v29  ;;  %v2558_v40 = vrot.slane %v2553_v24, %v4105_v28 }
 0x1c8   :  { %3460 = vmatprep.subr.bf16.mxu1 %v4001_v11  ;;  %3462 = vmatprep.mubr.msk.bf16.mxu1 %vm4002_vm1, %v4001_v11 }
 0x1ca   :  { %3379 = vmatpush3.bf16.msra.mxu0 %v3866_v31 }
 0x1cb   :  { %3461 = vmatpush3.bf16.msra.mxu1 %v3867_v32  ;;  %3380 = vmatprep.subr.bf16.mxu0 %v3868_v34  ;;  %v2551_v32 = vrot.slane %v2546_v25, %v4105_v28  ;;  %v2565_v34 = vrot.slane %v2560_v26, %v4105_v28 }
 0x1cc   :  { %3401 = vmatprep.subr.bf16.mxu1 %v3880_v35 }
 0x1ce   :  { %3463 = vmatmul.mubr.msk.bf16.vlgmr.msra.gmra.mrb[16].mxu1 %vm2000_vm2, %v4171_v6  ;;  %3381 = vmatpush3.bf16.msra.mxu0 %v3869_v61  ;;  %v3879_v6 = vld [vmem:[#allocation4 + $0x628] ss:$20 sps:$4 sm:$0xff]  }
 0x1cf   :  { %3382 = vmatprep.subr.bf16.mxu0 %v3870_v54  ;;  %3402 = vmatpush3.bf16.msra.mxu1 %v3882_v33 }
 0x1d0   :  { %3403 = vmatprep.subr.bf16.mxu1 %v3884_v36 }
 0x1d2   :  { %3383 = vmatpush3.bf16.msra.mxu0 %v3871_v37 }
 0x1d3   :  { %3384 = vmatprep.subr.bf16.mxu0 %v3872_v38  ;;  %3404 = vmatpush3.bf16.msra.mxu1 %v3886_v39 }
 0x1d4   :  { %3405 = vmatprep.subr.bf16.mxu1 %v3888_v41 }
 0x1d6   :  { %3385 = vmatpush3.bf16.msra.mxu0 %v3873_v42 }
 0x1d7   :  { %3386 = vmatprep.subr.bf16.mxu0 %v3874_v43  ;;  %3406 = vmatpush3.bf16.msra.mxu1 %v3890_v44 }
 0x1d8   :  { %3407 = vmatprep.subr.bf16.mxu1 %v3892_v45 }
 0x1da   :  { %3387 = vmatpush3.bf16.msra.mxu0 %v3875_v46 }
 0x1db   :  { %3388 = vmatprep.subr.bf16.mxu0 %v3876_v47  ;;  %3408 = vmatpush3.bf16.msra.mxu1 %v3894_v49 }
 0x1dc   :  { %3409 = vmatprep.subr.bf16.mxu1 %v3896_v51  ;;  %v3913_v51 = vld [vmem:[#allocation6 + $0x100] sm:$0xff]  }
 0x1de   :  { %3389 = vmatpush3.bf16.msra.mxu0 %v3877_v52 }
 0x1df   :  { %3390 = vmatprep.subr.bf16.mxu0 %v3878_v53  ;;  %3410 = vmatpush3.bf16.msra.mxu1 %v3898_v55  ;;  %v3914_v55 = vld [vmem:[#allocation6 + $0x108] sm:$0xff]  }
 0x1e0   :  { %3411 = vmatprep.subr.bf16.mxu1 %v3900_v56  ;;  %v3915_v56 = vld [vmem:[#allocation6 + $0x110] sm:$0xff]  }
 0x1e2   :  { %3391 = vmatpush3.bf16.msra.mxu0 %v3879_v6  ;;  %v3916_v6 = vld [vmem:[#allocation6 + $0x118] sm:$0xff]  }
 0x1e3   :  { %3423 = vmatprep.subr.bf16.mxu0 %v3881_v57  ;;  %3412 = vmatpush3.bf16.msra.mxu1 %v3902_v59  ;;  %v3917_v57 = vld [vmem:[#allocation6 + $0x120] sm:$0xff]   ;;  %v3918_v59 = vld [vmem:[#allocation6 + $0x128] ss:$0 sps:$4 sm:$0xff]  }
 0x1e5   :  { %2445 = vmatmul.mubr.bf16.vlgmr.msra.gmra.mrb[16].mxu0 %v4163_v48  ;;  %v3905_v48 = vld [vmem:[#allocation6 + $0x70] sm:$0xff]  }
 0x1e6   :  { %3424 = vmatpush3.bf16.msra.mxu0 %v3883_v60  ;;  %3413 = vmatprep.subr.bf16.mxu1 %v3905_v48  ;;  %v2896_v60 = vsel %vm2894_vm3, %v3918_v59, 0 }
 0x1e7   :  { %3425 = vmatprep.subr.bf16.mxu0 %v3885_v62  ;;  %3414 = vmatpush3.bf16.msra.mxu1 %v3907_v50 }
 0x1e8   :  { %3415 = vmatprep.subr.bf16.mxu1 %v3909_v10 }
 0x1ea   :  { %3426 = vmatpush3.bf16.msra.mxu0 %v3887_v63 }
 0x1eb   :  { %3427 = vmatprep.subr.bf16.mxu0 %v3889_v1  ;;  %3416 = vmatpush3.bf16.msra.mxu1 %v3911_v13 }
 0x1ec   :  { %3466 = vmatprep.subr.bf16.mxu1 %v4001_v11 }
 0x1ee   :  { %3428 = vmatpush3.bf16.msra.mxu0 %v3891_v20 }
 0x1ef   :  { %3429 = vmatprep.subr.bf16.mxu0 %v3893_v2 }
 0x1f2   :  { %3430 = vmatpush3.bf16.msra.mxu0 %v3895_v3 }
 0x1f3   :  { %3431 = vmatprep.subr.bf16.mxu0 %v3897_v4 }
 0x1f6   :  { %3432 = vmatpush3.bf16.msra.mxu0 %v3899_v5 }
 0x1f7   :  { %3433 = vmatprep.subr.bf16.mxu0 %v3901_v7 }
 0x1fa   :  { %3434 = vmatpush3.bf16.msra.mxu0 %v3903_v8 }
 0x1fb   :  { %3435 = vmatprep.subr.bf16.mxu0 %v3906_v9 }
 0x1fe   :  { %3436 = vmatpush3.bf16.msra.mxu0 %v3908_v58 }
 0x1ff   :  { %3437 = vmatprep.subr.bf16.mxu0 %v3910_v12 }
 0x202   :  { %3438 = vmatpush3.bf16.msra.mxu0 %v3912_v30 }
 0x278   :  { %v2161_v29 = vpop.f32.mrb[8].mxu0  ;;  %v2325_v31 = vpop.f32.mrb[8].mxu1 }
 0x279   :  { %v2492_v35 = vpack.c.bf16 %v2161_v29, %v2161_v29  ;;  %v2494_v61 = vpack.c.bf16 %v2325_v31, %v2325_v31  ;;  %v2163_v54 = vpop.f32.mrb[9].mxu0  ;;  %v2327_v33 = vpop.f32.mrb[9].mxu1 }
 0x27a   :  { %v2493_v36 = vpack.c.bf16 %v2163_v54, %v2163_v54  ;;  %v2495_v37 = vpack.c.bf16 %v2327_v33, %v2327_v33  ;;  %v2165_v38 = vpop.f32.mrb[10].mxu0  ;;  %v2329_v39 = vpop.f32.mrb[10].mxu1 }
 0x27b   :  { %v2573_v41 = vadd.bf16 %v2544_v27, %v2492_v35  ;;  %v2575_v42 = vadd.bf16 %v2558_v40, %v2494_v61  ;;  %v2166_v43 = vpop.f32.mrb[11].mxu0  ;;  %v2330_v44 = vpop.f32.mrb[11].mxu1 }
 0x27c   :  { %v2574_v45 = vadd.bf16 %v2551_v32, %v2493_v36  ;;  %v2576_v46 = vadd.bf16 %v2565_v34, %v2495_v37 }
 0x27d   :  { %v2578_v52 = vmax.bf16 %v4000_v0, %v2573_v41  ;;  %v2580_v53 = vmax.bf16 %v4000_v0, %v2575_v42 }
 0x27e   :  { %v2579_v47 = vmax.bf16 %v4000_v0, %v2574_v45  ;;  %v2581_v49 = vmax.bf16 %v4000_v0, %v2576_v46 }
 0x280   :  { %2930 = vmatprep.mubr.bf16.mxu1 %v2579_v47  ;;  %2970 = vmatprep.mubr.bf16.mxu0 %v2581_v49 }
 0x281   :  { %2931 = vmatmul.mubr.bf16.vlgmr.msra.gmra.mrb[20].mxu1 %v2578_v52  ;;  %2971 = vmatmul.mubr.bf16.vlgmr.msra.gmra.mrb[20].mxu0 %v2580_v53 }
 0x282   :  { %3467 = vmatpush3.bf16.msra.mxu1 %v3913_v51  ;;  %3478 = vmatprep.mubr.msk.bf16.mxu1 %vm4002_vm1, %v4001_v11 }
 0x283   :  { %3468 = vmatprep.subr.bf16.mxu1 %v4001_v11 }
 0x286   :  { %3469 = vmatpush3.bf16.msra.mxu1 %v3914_v55 }
 0x287   :  { %3470 = vmatprep.subr.bf16.mxu1 %v4001_v11 }
 0x28a   :  { %3471 = vmatpush3.bf16.msra.mxu1 %v3915_v56 }
 0x28b   :  { %3472 = vmatprep.subr.bf16.mxu1 %v4001_v11 }
 0x28e   :  { %3473 = vmatpush3.bf16.msra.mxu1 %v3916_v6 }
 0x28f   :  { %3474 = vmatprep.subr.bf16.mxu1 %v4001_v11 }
 0x292   :  { %3475 = vmatpush3.bf16.msra.mxu1 %v3917_v57 }
 0x293   :  { %3476 = vmatprep.subr.bf16.mxu1 %v4001_v11  ;;  %v2499_v11 = vcombine.high %v4193_v14, %v4193_v14 }
 0x295   :  { %v2513_v12 = vrot.slane %v2499_v11, %v4093_v19 }
 0x296   :  { %3477 = vmatpush3.bf16.msra.mxu1 %v2896_v60 }
 0x297   :  { %v2528_v13 = vrot.slane %v2513_v12, %v4093_v19  ;;  %v3290_v19 = vld [vmem:[%s4232_s6] ss:$0 sm:$0xff] }
 0x298   :  { %v3348_v62 = vpop.f32.mrb[12].mxu0  ;;  %v3370_v63 = vpop.f32.mrb[12].mxu1 }
 0x299   :  { %v3349_v1 = vpop.f32.mrb[13].mxu0  ;;  %v3371_v20 = vpop.f32.mrb[13].mxu1  ;;  %v2567_v16 = vpack.i.b16 %v2528_v13, %v2528_v13 }
 0x29a   :  { %v3350_v2 = vadd.f32 %v3349_v1, %v3348_v62  ;;  %v3372_v3 = vadd.f32 %v3371_v20, %v3370_v63  ;;  %v3351_v4 = vpop.f32.mrb[14].mxu0  ;;  %v3373_v5 = vpop.f32.mrb[14].mxu1 }
 0x29b   :  { %v3352_v7 = vpop.f32.mrb[15].mxu0  ;;  %v3374_v8 = vpop.f32.mrb[15].mxu1  ;;  %v2572_v24 = vrot.slane %v2567_v16, %v4105_v28 }
 0x29c   :  { %v2407_v48 = vadd.f32 %v3372_v3, %v3350_v2 }
 0x2a1   :  { %v2486_v9 = vpop.f32.mrb[16].mxu1 }
 0x2a2   :  { %v3464_v50 = vpop.f32.mrb[17].mxu1 }
 0x2a3   :  { %v2489_v58 = vpop.f32.mrb[18].mxu1 }
 0x2a4   :  { %v3465_v10 = vpop.f32.mrb[19].mxu1 }
 0x2b8   :  { %v3392_v30 = vpop.f32.mrb[16].mxu0 }
 0x2b9   :  { %v3393_v23 = vpop.f32.mrb[17].mxu0 }
 0x2ba   :  { %v3394_v15 = vadd.f32 %v3393_v23, %v3392_v30  ;;  %v3395_v17 = vpop.f32.mrb[18].mxu0 }
 0x2bb   :  { %v3396_v18 = vpop.f32.mrb[19].mxu0 }
 0x2bc   :  { %v2447_v21 = vadd.f32 %v3394_v15, %v2407_v48 }
 0x2be   :  { %v2487_v22 = vadd.f32 %v2486_v9, %v2447_v21 }
 0x2c0   :  { %v2496_v25 = vpack.c.bf16 %v2487_v22, %v2487_v22 }
 0x2c2   :  { %v2577_v26 = vadd.bf16 %v2572_v24, %v2496_v25 }
 0x2c4   :  { %v2582_v27 = vmax.bf16 %v4000_v0, %v2577_v26 }
 0x2c6   :  { %3479 = vmatmul.mubr.msk.bf16.vlgmr.msra.gmra.mrb[24].mxu1 %vm2890_vm4, %v2582_v27 }
 0x354   :  { %v3417_v14 = vpop.f32.mrb[20].mxu1  ;;  %v3439_v40 = vpop.f32.mrb[20].mxu0 }
 0x355   :  { %v3418_v29 = vpop.f32.mrb[21].mxu1  ;;  %v3440_v31 = vpop.f32.mrb[21].mxu0 }
 0x356   :  { %v3419_v32 = vadd.f32 %v3418_v29, %v3417_v14  ;;  %v3441_v34 = vadd.f32 %v3440_v31, %v3439_v40  ;;  %v3420_v35 = vpop.f32.mrb[22].mxu1  ;;  %v3442_v61 = vpop.f32.mrb[22].mxu0 }
 0x357   :  { %v3421_v54 = vpop.f32.mrb[23].mxu1  ;;  %v3443_v28 = vpop.f32.mrb[23].mxu0 }
 0x358   :  { %v2933_v33 = vadd.f32 %v3419_v32, %v3290_v19 }
 0x35a   :  { %v2973_v36 = vadd.f32 %v3441_v34, %v2933_v33 }
 0x399   :  { %v3012_v37 = vpop.f32.mrb[24].mxu1 }
 0x39a   :  { %v3013_v38 = vadd.f32 %v3012_v37, %v2973_v36  ;;  %v3480_v0 = vpop.f32.mrb[25].mxu1 }
 0x39b   :  { %v3015_v39 = vpop.f32.mrb[26].mxu1 }
 0x39c   :  { %3919 = vtanh.f32 %v3013_v38  ;;  %v3481_v41 = vpop.f32.mrb[27].mxu1 }
 0x3a6   :  { %v3920_v42 = vpop.eup %3919 }
 0x3a7   :  { %3019 = vst [vmem:[%s4233_s7] sm:$0xff] %v3920_v42 }
 0x3a8   :  { %3024 = vsyncpa [#allocation3], 1 }
 0x3a9   :  { %3025 = vsyncpa [#allocation5], 1 }

</bundles_post_ra>
